<compile_context>
chip_gen: v5e
topology: v5e:2x2
jax: 0.10.0
libtpu: 0.0.40
codegen_flags: <defaults>
</compile_context>

<pallas_src>
import jax
import jax.numpy as jnp
import numpy as np
from jax.experimental import pallas as pl
from jax.experimental.pallas import tpu as pltpu


def _largest_divisor_leq(n: int, cap: int) -> int:
    cap = max(1, min(int(cap), int(n)))
    for d in range(cap, 0, -1):
        if n % d == 0:
            return d
    return 1


def make_attention_kernel(seq_len: int, s_tile: int, chunk: int, mask_needed: bool):
    """Online-softmax attention-pooling kernel.

    Kernel args:
      xw_ref : (b_tile, F)          hoisted x @ W^T tile (f32)
      m_ref  : (s_tile, b_tile, F)  sequence tile, native (S, B, F) layout
      out_ref: (b_tile, F)          pooled output tile
      m_sc   : (b_tile, 1)  VMEM    running max of scores
      l_sc   : (b_tile, 1)  VMEM    running sum of exp(scores - max)
      acc_sc : (b_tile, F)  VMEM    unnormalized attention-pooled accumulator
    """
    n_chunks = s_tile // chunk
    assert n_chunks * chunk == s_tile
    unroll = n_chunks if n_chunks <= 8 else 8  # partial unroll for LLO visibility

    def kernel(xw_ref, m_ref, out_ref, m_sc, l_sc, acc_sc):
        s_idx = pl.program_id(1)

        # ---- init (once per batch tile) --------------------------------------
        @pl.when(s_idx == 0)
        def _init():
            m_sc[...] = jnp.full_like(m_sc, -jnp.inf)
            l_sc[...] = jnp.zeros_like(l_sc)
            acc_sc[...] = jnp.zeros_like(acc_sc)

        xw = xw_ref[...].astype(jnp.float32)          # (b_tile, F), tiny

        # ---- chunked online-softmax over the seq rows of this tile -----------
        def body(c, carry):
            off = pl.multiple_of(c * chunk, chunk)
            m_c = m_ref[pl.ds(off, chunk), :, :].astype(jnp.float32)  # (chunk,bt,F)

            if mask_needed:
                bt = m_ref.shape[1]
                t_ids = (s_idx * s_tile + off
                         + jax.lax.broadcasted_iota(jnp.int32, (chunk, bt, 1), 0))
                valid = t_ids < seq_len
                # zero padded rows so 0 * garbage can never inject NaN/Inf
                m_c = jnp.where(valid, m_c, 0.0)

            # scores[t, b] = sum_f xw[b, f] * M[t, b, f]   (lane reduction)
            scores = jnp.sum(m_c * xw, axis=-1, keepdims=True)       # (chunk,bt,1)
            if mask_needed:
                scores = jnp.where(valid, scores, -jnp.inf)

            m_prev = m_sc[...]                                        # (bt, 1)
            m_new = jnp.maximum(m_prev, jnp.max(scores, axis=0))
            corr = jnp.exp(m_prev - m_new)
            p = jnp.exp(scores - m_new)                               # (chunk,bt,1)

            l_sc[...] = corr * l_sc[...] + jnp.sum(p, axis=0)
            acc_sc[...] = corr * acc_sc[...] + jnp.sum(p * m_c, axis=0)
            m_sc[...] = m_new
            return carry

        jax.lax.fori_loop(0, n_chunks, body, 0, unroll=unroll)

        # ---- finalize (exact divide, once per batch tile) ---------------------
        @pl.when(s_idx == pl.num_programs(1) - 1)
        def _finalize():
            out_ref[...] = (acc_sc[...] / l_sc[...]).astype(out_ref.dtype)

    return kernel


def attention_forward(M, x, weight, *, s_tile=None, b_tile=None):
    """Attention pooling.

    M      : (S, B, F)  sequence data (native PyTorch layout, NOT transposed)
    x      : (B, F)     global feature
    weight : (G, F)     nn.Linear weight (PyTorch layout)
    returns: (B, F)
    """
    S, B, F = M.shape
    G, Fw = weight.shape
    assert Fw == F
    assert G == F, "bmm in the reference requires global_size == feature_size"

    itemsize = jnp.dtype(M.dtype).itemsize

    # ---- generation-aware VMEM budget ---------------------------------------
    try:
        info = pltpu.get_tpu_info()
        vmem_cap = int(getattr(info, "vmem_capacity_bytes", 0)) or (64 << 20)
    except Exception:
        vmem_cap = 64 << 20                         # conservative (v7x per-TC)
    target_block_bytes = max(1 << 20, min(16 << 20, vmem_cap // 6))

    # ---- batch tile -----------------------------------------------------------
    sub = 16 if jnp.dtype(M.dtype) == jnp.dtype(jnp.bfloat16) else 8
    if b_tile is None:
        if B >= 2 * sub and B % (2 * sub) == 0:
            b_tile = B // 2     # >= 2 "parallel" batch blocks -> both TCs on v7x
        else:
            b_tile = B          # one fully contiguous (s_tile, B, F) slab per DMA
    b_tile = int(b_tile)
    assert B % b_tile == 0
    num_b = B // b_tile

    # ---- seq tile: sized from b_tile*F*itemsize, divisor of S when possible ---
    row_bytes = max(1, b_tile * F * itemsize)
    s_tile_cap = max(8, target_block_bytes // row_bytes)
    if s_tile is None:
        cap = int(min(S, s_tile_cap))
        d = _largest_divisor_leq(S, cap)
        if d == S or d >= max(8, cap // 4):
            s_tile = d                                   # mask-free divisor tile
        else:
            # awkward S (e.g. prime): accept a ragged last block + static mask
            s_tile = int(max(8, (cap // 8) * 8))
    s_tile = int(max(1, min(int(s_tile), S)))
    mask_needed = (S % s_tile) != 0
    num_s = pl.cdiv(S, s_tile)

    # ---- in-kernel chunk: bound the per-step vreg working set -----------------
    chunk_cap = max(1, min(16, (64 << 10) // max(1, b_tile * F * 4)))
    chunk = _largest_divisor_leq(s_tile, chunk_cap)

    # ---- hoisted transform (tiny, keeps the MXU work out of the kernel) -------
    xw = jnp.dot(x.astype(jnp.float32), jnp.transpose(weight).astype(jnp.float32),
                 preferred_element_type=jnp.float32)     # (B, F)

    kernel = make_attention_kernel(S, s_tile, chunk, mask_needed)

    block_bytes = s_tile * b_tile * F * itemsize
    resident_bytes = (2 * block_bytes                    # M double buffer
                      + 6 * b_tile * F * 4               # xw/out blocks + acc scratch
                      + (1 << 20))                       # misc headroom
    vmem_limit = int(min(vmem_cap * 3 // 4,
                         max(32 << 20, resident_bytes + (4 << 20))))
    vmem_limit = max(vmem_limit, resident_bytes)

    cost = pl.CostEstimate(
        flops=4 * S * B * F + 4 * S * B,
        transcendentals=S * B + 2 * B * int(num_s) * (s_tile // chunk),
        bytes_accessed=int(M.size) * itemsize + 3 * B * F * 4,
    )

    grid_spec = pltpu.PrefetchScalarGridSpec(
        num_scalar_prefetch=0,
        grid=(num_b, num_s),                             # seq = reduction, innermost
        in_specs=[
            pl.BlockSpec((b_tile, F), lambda b, s: (b, 0)),             # xw (resident per b-tile)
            pl.BlockSpec((s_tile, b_tile, F), lambda b, s: (s, b, 0)),  # M (native layout)
        ],
        out_specs=pl.BlockSpec((b_tile, F), lambda b, s: (b, 0)),
        scratch_shapes=[
            pltpu.VMEM((b_tile, 1), jnp.float32),        # running max
            pltpu.VMEM((b_tile, 1), jnp.float32),        # running sum
            pltpu.VMEM((b_tile, F), jnp.float32),        # pooled accumulator
        ],
    )

    return pl.pallas_call(
        kernel,
        out_shape=jax.ShapeDtypeStruct((B, F), x.dtype),
        grid_spec=grid_spec,
        compiler_params=pltpu.CompilerParams(
            dimension_semantics=("parallel", "arbitrary"),
            vmem_limit_bytes=vmem_limit,
        ),
        cost_estimate=cost,
    )(xw, M)


def attention_reference(M, x, weight):
    """Pure-JAX reference of the same (intended) semantics."""
    xw = x @ weight.T                                    # (B, G)
    scores = jnp.einsum("bf,sbf->sb", xw, M)             # (S, B)
    alpha = jax.nn.softmax(scores, axis=0)
    return jnp.einsum("sb,sbf->bf", alpha, M)            # (B, F)


if __name__ == "__main__":
    # Small, layout-friendly shapes: seq=256, batch=8, feature=global=128
    # (F multiple of 128 -> lane-dense, B multiple of 8 -> sublane-dense).
    S, B, F = 256, 8, 128
    G = F

    key = jax.random.PRNGKey(0)
    k_m, k_x, k_w = jax.random.split(key, 3)

    M = jax.random.normal(k_m, (S, B, F), dtype=jnp.float32)
    x = jax.random.normal(k_x, (B, F), dtype=jnp.float32)
    bound = 1.0 / np.sqrt(F)
    weight = jax.random.uniform(k_w, (G, F), dtype=jnp.float32,
                                minval=-bound, maxval=bound)

    ref = jax.block_until_ready(attention_reference(M, x, weight))

    # 1) multi-step seq reduction (s_tile=64 -> 4 grid steps, mask-free path)
    out = jax.block_until_ready(attention_forward(M, x, weight, s_tile=64))
    assert out.shape == (B, F)
    np.testing.assert_allclose(np.asarray(out), np.asarray(ref),
                               rtol=5e-4, atol=1e-4)

    # 2) auto-tiled path (divisor tile, typically single seq step for this S)
    out2 = jax.block_until_ready(attention_forward(M, x, weight))
    np.testing.assert_allclose(np.asarray(out2), np.asarray(ref),
                               rtol=5e-4, atol=1e-4)

    # 3) ragged seq length -> statically-gated mask path
    S2 = 100
    M2 = jax.random.normal(k_m, (S2, B, F), dtype=jnp.float32)
    ref3 = jax.block_until_ready(attention_reference(M2, x, weight))
    out3 = jax.block_until_ready(attention_forward(M2, x, weight, s_tile=32))
    np.testing.assert_allclose(np.asarray(out3), np.asarray(ref3),
                               rtol=5e-4, atol=1e-4)

    print("KERNEL_OK")
</pallas_src>

<mosaic_0001>
module attributes {stable_mosaic.version = 11 : i64} {
  func.func @kernel(%arg0: i32, %arg1: i32, %arg2: memref<8x128xf32, #tpu.memory_space<vmem>>, %arg3: memref<64x8x128xf32, #tpu.memory_space<vmem>>, %arg4: memref<8x128xf32, #tpu.memory_space<vmem>>, %arg5: memref<8x1xf32, #tpu.memory_space<vmem>>, %arg6: memref<8x1xf32, #tpu.memory_space<vmem>>, %arg7: memref<8x128xf32, #tpu.memory_space<vmem>>) attributes {dimension_semantics = [#tpu.dimension_semantics<parallel>, #tpu.dimension_semantics<arbitrary>], iteration_bounds = array<i64: 1, 4>, scalar_prefetch = 0 : i64, scratch_operands = 3 : i64, tpu.core_type = #tpu.core_type<tc>, window_params = [{transform_indices = @transform_0, window_bounds = array<i64: 8, 128>}, {transform_indices = @transform_1, window_bounds = array<i64: 64, 8, 128>}, {transform_indices = @transform_2, window_bounds = array<i64: 8, 128>}]} {
    %c0_i32 = arith.constant 0 : i32
    %0 = arith.cmpi eq, %arg1, %c0_i32 : i32
    %1 = arith.extui %0 : i1 to i32
    %c0_i32_0 = arith.constant 0 : i32
    %2 = arith.cmpi ne, %1, %c0_i32_0 : i32
    scf.if %2 {
      %cst_79 = arith.constant 0xFF800000 : f32
      %135 = vector.broadcast %cst_79 : f32 to vector<8x1xf32>
      %c0_80 = arith.constant 0 : index
      %c0_81 = arith.constant 0 : index
      %136 = vector.load %arg5[%c0_80, %c0_81] : memref<8x1xf32, #tpu.memory_space<vmem>>, vector<8x1xf32>
      tpu.vector_store %arg5[%c0_80, %c0_81], %135 {strides = array<i32>} : memref<8x1xf32, #tpu.memory_space<vmem>>, vector<8x1xf32>,
      %cst_82 = arith.constant 0.000000e+00 : f32
      %137 = vector.broadcast %cst_82 : f32 to vector<8x1xf32>
      %c0_83 = arith.constant 0 : index
      %c0_84 = arith.constant 0 : index
      %138 = vector.load %arg6[%c0_83, %c0_84] : memref<8x1xf32, #tpu.memory_space<vmem>>, vector<8x1xf32>
      tpu.vector_store %arg6[%c0_83, %c0_84], %137 {strides = array<i32>} : memref<8x1xf32, #tpu.memory_space<vmem>>, vector<8x1xf32>,
      %cst_85 = arith.constant 0.000000e+00 : f32
      %139 = vector.broadcast %cst_85 : f32 to vector<8x128xf32>
      %c0_86 = arith.constant 0 : index
      %c0_87 = arith.constant 0 : index
      %140 = vector.load %arg7[%c0_86, %c0_87] : memref<8x128xf32, #tpu.memory_space<vmem>>, vector<8x128xf32>
      tpu.vector_store %arg7[%c0_86, %c0_87], %139 {strides = array<i32>} : memref<8x128xf32, #tpu.memory_space<vmem>>, vector<8x128xf32>,
    } else {
    }
    %c0 = arith.constant 0 : index
    %c0_1 = arith.constant 0 : index
    %3 = vector.load %arg2[%c0, %c0_1] : memref<8x128xf32, #tpu.memory_space<vmem>>, vector<8x128xf32>
    %c0_i32_2 = arith.constant 0 : i32
    %c16_i32 = arith.constant 16 : i32
    %4 = arith.muli %c0_i32_2, %c16_i32 : i32
    %5 = tpu.assume_multiple %4, 16 : i32
    %6 = arith.index_cast %5 : i32 to index
    %c0_3 = arith.constant 0 : index
    %c0_4 = arith.constant 0 : index
    %7 = vector.load %arg3[%6, %c0_3, %c0_4] : memref<64x8x128xf32, #tpu.memory_space<vmem>>, vector<16x8x128xf32>
    %8 = vector.shape_cast %3 : vector<8x128xf32> to vector<1x8x128xf32>
    %9 = vector.broadcast %8 : vector<1x8x128xf32> to vector<16x8x128xf32>
    %10 = arith.mulf %7, %9 : vector<16x8x128xf32>
    %cst = arith.constant dense<0.000000e+00> : vector<16x8xf32>
    %11 = vector.multi_reduction <add>, %10, %cst [2] : vector<16x8x128xf32> to vector<16x8xf32>
    %12 = vector.shape_cast %11 : vector<16x8xf32> to vector<16x8x1xf32>
    %c0_5 = arith.constant 0 : index
    %c0_6 = arith.constant 0 : index
    %13 = vector.load %arg5[%c0_5, %c0_6] : memref<8x1xf32, #tpu.memory_space<vmem>>, vector<8x1xf32>
    %cst_7 = arith.constant dense<0xFF800000> : vector<8x1xf32>
    %14 = vector.multi_reduction <maximumf>, %12, %cst_7 [0] : vector<16x8x1xf32> to vector<8x1xf32>
    %15 = arith.maximumf %13, %14 : vector<8x1xf32>
    %16 = arith.subf %13, %15 : vector<8x1xf32>
    %17 = math.exp %16 : vector<8x1xf32>
    %18 = vector.shape_cast %15 : vector<8x1xf32> to vector<1x8x1xf32>
    %19 = vector.broadcast %18 : vector<1x8x1xf32> to vector<16x8x1xf32>
    %20 = arith.subf %12, %19 : vector<16x8x1xf32>
    %21 = math.exp %20 : vector<16x8x1xf32>
    %c0_8 = arith.constant 0 : index
    %c0_9 = arith.constant 0 : index
    %22 = vector.load %arg6[%c0_8, %c0_9] : memref<8x1xf32, #tpu.memory_space<vmem>>, vector<8x1xf32>
    %23 = arith.mulf %17, %22 : vector<8x1xf32>
    %cst_10 = arith.constant dense<0.000000e+00> : vector<8x1xf32>
    %24 = vector.multi_reduction <add>, %21, %cst_10 [0] : vector<16x8x1xf32> to vector<8x1xf32>
    %25 = arith.addf %23, %24 : vector<8x1xf32>
    %c0_11 = arith.constant 0 : index
    %c0_12 = arith.constant 0 : index
    %26 = vector.load %arg6[%c0_11, %c0_12] : memref<8x1xf32, #tpu.memory_space<vmem>>, vector<8x1xf32>
    tpu.vector_store %arg6[%c0_11, %c0_12], %25 {strides = array<i32>} : memref<8x1xf32, #tpu.memory_space<vmem>>, vector<8x1xf32>,
    %c0_13 = arith.constant 0 : index
    %c0_14 = arith.constant 0 : index
    %27 = vector.load %arg7[%c0_13, %c0_14] : memref<8x128xf32, #tpu.memory_space<vmem>>, vector<8x128xf32>
    %28 = vector.broadcast %17 : vector<8x1xf32> to vector<8x128xf32>
    %29 = arith.mulf %28, %27 : vector<8x128xf32>
    %30 = vector.broadcast %21 : vector<16x8x1xf32> to vector<16x8x128xf32>
    %31 = arith.mulf %30, %7 : vector<16x8x128xf32>
    %cst_15 = arith.constant dense<0.000000e+00> : vector<8x128xf32>
    %32 = vector.multi_reduction <add>, %31, %cst_15 [0] : vector<16x8x128xf32> to vector<8x128xf32>
    %33 = arith.addf %29, %32 : vector<8x128xf32>
    %c0_16 = arith.constant 0 : index
    %c0_17 = arith.constant 0 : index
    %34 = vector.load %arg7[%c0_16, %c0_17] : memref<8x128xf32, #tpu.memory_space<vmem>>, vector<8x128xf32>
    tpu.vector_store %arg7[%c0_16, %c0_17], %33 {strides = array<i32>} : memref<8x128xf32, #tpu.memory_space<vmem>>, vector<8x128xf32>,
    %c0_18 = arith.constant 0 : index
    %c0_19 = arith.constant 0 : index
    %35 = vector.load %arg5[%c0_18, %c0_19] : memref<8x1xf32, #tpu.memory_space<vmem>>, vector<8x1xf32>
    tpu.vector_store %arg5[%c0_18, %c0_19], %15 {strides = array<i32>} : memref<8x1xf32, #tpu.memory_space<vmem>>, vector<8x1xf32>,
    %c1_i32 = arith.constant 1 : i32
    %c16_i32_20 = arith.constant 16 : i32
    %36 = arith.muli %c1_i32, %c16_i32_20 : i32
    %37 = tpu.assume_multiple %36, 16 : i32
    %38 = arith.index_cast %37 : i32 to index
    %c0_21 = arith.constant 0 : index
    %c0_22 = arith.constant 0 : index
    %39 = vector.load %arg3[%38, %c0_21, %c0_22] : memref<64x8x128xf32, #tpu.memory_space<vmem>>, vector<16x8x128xf32>
    %40 = vector.shape_cast %3 : vector<8x128xf32> to vector<1x8x128xf32>
    %41 = vector.broadcast %40 : vector<1x8x128xf32> to vector<16x8x128xf32>
    %42 = arith.mulf %39, %41 : vector<16x8x128xf32>
    %cst_23 = arith.constant dense<0.000000e+00> : vector<16x8xf32>
    %43 = vector.multi_reduction <add>, %42, %cst_23 [2] : vector<16x8x128xf32> to vector<16x8xf32>
    %44 = vector.shape_cast %43 : vector<16x8xf32> to vector<16x8x1xf32>
    %c0_24 = arith.constant 0 : index
    %c0_25 = arith.constant 0 : index
    %45 = vector.load %arg5[%c0_24, %c0_25] : memref<8x1xf32, #tpu.memory_space<vmem>>, vector<8x1xf32>
    %cst_26 = arith.constant dense<0xFF800000> : vector<8x1xf32>
    %46 = vector.multi_reduction <maximumf>, %44, %cst_26 [0] : vector<16x8x1xf32> to vector<8x1xf32>
    %47 = arith.maximumf %45, %46 : vector<8x1xf32>
    %48 = arith.subf %45, %47 : vector<8x1xf32>
    %49 = math.exp %48 : vector<8x1xf32>
    %50 = vector.shape_cast %47 : vector<8x1xf32> to vector<1x8x1xf32>
    %51 = vector.broadcast %50 : vector<1x8x1xf32> to vector<16x8x1xf32>
    %52 = arith.subf %44, %51 : vector<16x8x1xf32>
    %53 = math.exp %52 : vector<16x8x1xf32>
    %c0_27 = arith.constant 0 : index
    %c0_28 = arith.constant 0 : index
    %54 = vector.load %arg6[%c0_27, %c0_28] : memref<8x1xf32, #tpu.memory_space<vmem>>, vector<8x1xf32>
    %55 = arith.mulf %49, %54 : vector<8x1xf32>
    %cst_29 = arith.constant dense<0.000000e+00> : vector<8x1xf32>
    %56 = vector.multi_reduction <add>, %53, %cst_29 [0] : vector<16x8x1xf32> to vector<8x1xf32>
    %57 = arith.addf %55, %56 : vector<8x1xf32>
    %c0_30 = arith.constant 0 : index
    %c0_31 = arith.constant 0 : index
    %58 = vector.load %arg6[%c0_30, %c0_31] : memref<8x1xf32, #tpu.memory_space<vmem>>, vector<8x1xf32>
    tpu.vector_store %arg6[%c0_30, %c0_31], %57 {strides = array<i32>} : memref<8x1xf32, #tpu.memory_space<vmem>>, vector<8x1xf32>,
    %c0_32 = arith.constant 0 : index
    %c0_33 = arith.constant 0 : index
    %59 = vector.load %arg7[%c0_32, %c0_33] : memref<8x128xf32, #tpu.memory_space<vmem>>, vector<8x128xf32>
    %60 = vector.broadcast %49 : vector<8x1xf32> to vector<8x128xf32>
    %61 = arith.mulf %60, %59 : vector<8x128xf32>
    %62 = vector.broadcast %53 : vector<16x8x1xf32> to vector<16x8x128xf32>
    %63 = arith.mulf %62, %39 : vector<16x8x128xf32>
    %cst_34 = arith.constant dense<0.000000e+00> : vector<8x128xf32>
    %64 = vector.multi_reduction <add>, %63, %cst_34 [0] : vector<16x8x128xf32> to vector<8x128xf32>
    %65 = arith.addf %61, %64 : vector<8x128xf32>
    %c0_35 = arith.constant 0 : index
    %c0_36 = arith.constant 0 : index
    %66 = vector.load %arg7[%c0_35, %c0_36] : memref<8x128xf32, #tpu.memory_space<vmem>>, vector<8x128xf32>
    tpu.vector_store %arg7[%c0_35, %c0_36], %65 {strides = array<i32>} : memref<8x128xf32, #tpu.memory_space<vmem>>, vector<8x128xf32>,
    %c0_37 = arith.constant 0 : index
    %c0_38 = arith.constant 0 : index
    %67 = vector.load %arg5[%c0_37, %c0_38] : memref<8x1xf32, #tpu.memory_space<vmem>>, vector<8x1xf32>
    tpu.vector_store %arg5[%c0_37, %c0_38], %47 {strides = array<i32>} : memref<8x1xf32, #tpu.memory_space<vmem>>, vector<8x1xf32>,
    %c2_i32 = arith.constant 2 : i32
    %c16_i32_39 = arith.constant 16 : i32
    %68 = arith.muli %c2_i32, %c16_i32_39 : i32
    %69 = tpu.assume_multiple %68, 16 : i32
    %70 = arith.index_cast %69 : i32 to index
    %c0_40 = arith.constant 0 : index
    %c0_41 = arith.constant 0 : index
    %71 = vector.load %arg3[%70, %c0_40, %c0_41] : memref<64x8x128xf32, #tpu.memory_space<vmem>>, vector<16x8x128xf32>
    %72 = vector.shape_cast %3 : vector<8x128xf32> to vector<1x8x128xf32>
    %73 = vector.broadcast %72 : vector<1x8x128xf32> to vector<16x8x128xf32>
    %74 = arith.mulf %71, %73 : vector<16x8x128xf32>
    %cst_42 = arith.constant dense<0.000000e+00> : vector<16x8xf32>
    %75 = vector.multi_reduction <add>, %74, %cst_42 [2] : vector<16x8x128xf32> to vector<16x8xf32>
    %76 = vector.shape_cast %75 : vector<16x8xf32> to vector<16x8x1xf32>
    %c0_43 = arith.constant 0 : index
    %c0_44 = arith.constant 0 : index
    %77 = vector.load %arg5[%c0_43, %c0_44] : memref<8x1xf32, #tpu.memory_space<vmem>>, vector<8x1xf32>
    %cst_45 = arith.constant dense<0xFF800000> : vector<8x1xf32>
    %78 = vector.multi_reduction <maximumf>, %76, %cst_45 [0] : vector<16x8x1xf32> to vector<8x1xf32>
    %79 = arith.maximumf %77, %78 : vector<8x1xf32>
    %80 = arith.subf %77, %79 : vector<8x1xf32>
    %81 = math.exp %80 : vector<8x1xf32>
    %82 = vector.shape_cast %79 : vector<8x1xf32> to vector<1x8x1xf32>
    %83 = vector.broadcast %82 : vector<1x8x1xf32> to vector<16x8x1xf32>
    %84 = arith.subf %76, %83 : vector<16x8x1xf32>
    %85 = math.exp %84 : vector<16x8x1xf32>
    %c0_46 = arith.constant 0 : index
    %c0_47 = arith.constant 0 : index
    %86 = vector.load %arg6[%c0_46, %c0_47] : memref<8x1xf32, #tpu.memory_space<vmem>>, vector<8x1xf32>
    %87 = arith.mulf %81, %86 : vector<8x1xf32>
    %cst_48 = arith.constant dense<0.000000e+00> : vector<8x1xf32>
    %88 = vector.multi_reduction <add>, %85, %cst_48 [0] : vector<16x8x1xf32> to vector<8x1xf32>
    %89 = arith.addf %87, %88 : vector<8x1xf32>
    %c0_49 = arith.constant 0 : index
    %c0_50 = arith.constant 0 : index
    %90 = vector.load %arg6[%c0_49, %c0_50] : memref<8x1xf32, #tpu.memory_space<vmem>>, vector<8x1xf32>
    tpu.vector_store %arg6[%c0_49, %c0_50], %89 {strides = array<i32>} : memref<8x1xf32, #tpu.memory_space<vmem>>, vector<8x1xf32>,
    %c0_51 = arith.constant 0 : index
    %c0_52 = arith.constant 0 : index
    %91 = vector.load %arg7[%c0_51, %c0_52] : memref<8x128xf32, #tpu.memory_space<vmem>>, vector<8x128xf32>
    %92 = vector.broadcast %81 : vector<8x1xf32> to vector<8x128xf32>
    %93 = arith.mulf %92, %91 : vector<8x128xf32>
    %94 = vector.broadcast %85 : vector<16x8x1xf32> to vector<16x8x128xf32>
    %95 = arith.mulf %94, %71 : vector<16x8x128xf32>
    %cst_53 = arith.constant dense<0.000000e+00> : vector<8x128xf32>
    %96 = vector.multi_reduction <add>, %95, %cst_53 [0] : vector<16x8x128xf32> to vector<8x128xf32>
    %97 = arith.addf %93, %96 : vector<8x128xf32>
    %c0_54 = arith.constant 0 : index
    %c0_55 = arith.constant 0 : index
    %98 = vector.load %arg7[%c0_54, %c0_55] : memref<8x128xf32, #tpu.memory_space<vmem>>, vector<8x128xf32>
    tpu.vector_store %arg7[%c0_54, %c0_55], %97 {strides = array<i32>} : memref<8x128xf32, #tpu.memory_space<vmem>>, vector<8x128xf32>,
    %c0_56 = arith.constant 0 : index
    %c0_57 = arith.constant 0 : index
    %99 = vector.load %arg5[%c0_56, %c0_57] : memref<8x1xf32, #tpu.memory_space<vmem>>, vector<8x1xf32>
    tpu.vector_store %arg5[%c0_56, %c0_57], %79 {strides = array<i32>} : memref<8x1xf32, #tpu.memory_space<vmem>>, vector<8x1xf32>,
    %c3_i32 = arith.constant 3 : i32
    %c16_i32_58 = arith.constant 16 : i32
    %100 = arith.muli %c3_i32, %c16_i32_58 : i32
    %101 = tpu.assume_multiple %100, 16 : i32
    %102 = arith.index_cast %101 : i32 to index
    %c0_59 = arith.constant 0 : index
    %c0_60 = arith.constant 0 : index
    %103 = vector.load %arg3[%102, %c0_59, %c0_60] : memref<64x8x128xf32, #tpu.memory_space<vmem>>, vector<16x8x128xf32>
    %104 = vector.shape_cast %3 : vector<8x128xf32> to vector<1x8x128xf32>
    %105 = vector.broadcast %104 : vector<1x8x128xf32> to vector<16x8x128xf32>
    %106 = arith.mulf %103, %105 : vector<16x8x128xf32>
    %cst_61 = arith.constant dense<0.000000e+00> : vector<16x8xf32>
    %107 = vector.multi_reduction <add>, %106, %cst_61 [2] : vector<16x8x128xf32> to vector<16x8xf32>
    %108 = vector.shape_cast %107 : vector<16x8xf32> to vector<16x8x1xf32>
    %c0_62 = arith.constant 0 : index
    %c0_63 = arith.constant 0 : index
    %109 = vector.load %arg5[%c0_62, %c0_63] : memref<8x1xf32, #tpu.memory_space<vmem>>, vector<8x1xf32>
    %cst_64 = arith.constant dense<0xFF800000> : vector<8x1xf32>
    %110 = vector.multi_reduction <maximumf>, %108, %cst_64 [0] : vector<16x8x1xf32> to vector<8x1xf32>
    %111 = arith.maximumf %109, %110 : vector<8x1xf32>
    %112 = arith.subf %109, %111 : vector<8x1xf32>
    %113 = math.exp %112 : vector<8x1xf32>
    %114 = vector.shape_cast %111 : vector<8x1xf32> to vector<1x8x1xf32>
    %115 = vector.broadcast %114 : vector<1x8x1xf32> to vector<16x8x1xf32>
    %116 = arith.subf %108, %115 : vector<16x8x1xf32>
    %117 = math.exp %116 : vector<16x8x1xf32>
    %c0_65 = arith.constant 0 : index
    %c0_66 = arith.constant 0 : index
    %118 = vector.load %arg6[%c0_65, %c0_66] : memref<8x1xf32, #tpu.memory_space<vmem>>, vector<8x1xf32>
    %119 = arith.mulf %113, %118 : vector<8x1xf32>
    %cst_67 = arith.constant dense<0.000000e+00> : vector<8x1xf32>
    %120 = vector.multi_reduction <add>, %117, %cst_67 [0] : vector<16x8x1xf32> to vector<8x1xf32>
    %121 = arith.addf %119, %120 : vector<8x1xf32>
    %c0_68 = arith.constant 0 : index
    %c0_69 = arith.constant 0 : index
    %122 = vector.load %arg6[%c0_68, %c0_69] : memref<8x1xf32, #tpu.memory_space<vmem>>, vector<8x1xf32>
    tpu.vector_store %arg6[%c0_68, %c0_69], %121 {strides = array<i32>} : memref<8x1xf32, #tpu.memory_space<vmem>>, vector<8x1xf32>,
    %c0_70 = arith.constant 0 : index
    %c0_71 = arith.constant 0 : index
    %123 = vector.load %arg7[%c0_70, %c0_71] : memref<8x128xf32, #tpu.memory_space<vmem>>, vector<8x128xf32>
    %124 = vector.broadcast %113 : vector<8x1xf32> to vector<8x128xf32>
    %125 = arith.mulf %124, %123 : vector<8x128xf32>
    %126 = vector.broadcast %117 : vector<16x8x1xf32> to vector<16x8x128xf32>
    %127 = arith.mulf %126, %103 : vector<16x8x128xf32>
    %cst_72 = arith.constant dense<0.000000e+00> : vector<8x128xf32>
    %128 = vector.multi_reduction <add>, %127, %cst_72 [0] : vector<16x8x128xf32> to vector<8x128xf32>
    %129 = arith.addf %125, %128 : vector<8x128xf32>
    %c0_73 = arith.constant 0 : index
    %c0_74 = arith.constant 0 : index
    %130 = vector.load %arg7[%c0_73, %c0_74] : memref<8x128xf32, #tpu.memory_space<vmem>>, vector<8x128xf32>
    tpu.vector_store %arg7[%c0_73, %c0_74], %129 {strides = array<i32>} : memref<8x128xf32, #tpu.memory_space<vmem>>, vector<8x128xf32>,
    %c0_75 = arith.constant 0 : index
    %c0_76 = arith.constant 0 : index
    %131 = vector.load %arg5[%c0_75, %c0_76] : memref<8x1xf32, #tpu.memory_space<vmem>>, vector<8x1xf32>
    tpu.vector_store %arg5[%c0_75, %c0_76], %111 {strides = array<i32>} : memref<8x1xf32, #tpu.memory_space<vmem>>, vector<8x1xf32>,
    %c4_i32 = arith.constant 4 : i32
    %c3_i32_77 = arith.constant 3 : i32
    %132 = arith.cmpi eq, %arg1, %c3_i32_77 : i32
    %133 = arith.extui %132 : i1 to i32
    %c0_i32_78 = arith.constant 0 : i32
    %134 = arith.cmpi ne, %133, %c0_i32_78 : i32
    scf.if %134 {
      %c0_79 = arith.constant 0 : index
      %c0_80 = arith.constant 0 : index
      %135 = vector.load %arg7[%c0_79, %c0_80] : memref<8x128xf32, #tpu.memory_space<vmem>>, vector<8x128xf32>
      %c0_81 = arith.constant 0 : index
      %c0_82 = arith.constant 0 : index
      %136 = vector.load %arg6[%c0_81, %c0_82] : memref<8x1xf32, #tpu.memory_space<vmem>>, vector<8x1xf32>
      %137 = vector.broadcast %136 : vector<8x1xf32> to vector<8x128xf32>
      %138 = arith.divf %135, %137 : vector<8x128xf32>
      %c0_83 = arith.constant 0 : index
      %c0_84 = arith.constant 0 : index
      %139 = vector.load %arg4[%c0_83, %c0_84] : memref<8x128xf32, #tpu.memory_space<vmem>>, vector<8x128xf32>
      tpu.vector_store %arg4[%c0_83, %c0_84], %138 {strides = array<i32>} : memref<8x128xf32, #tpu.memory_space<vmem>>, vector<8x128xf32>,
    } else {
    }
    return
  }
  func.func @transform_0(%arg0: i32, %arg1: i32) -> (i32, i32) {
    %c0_i32 = arith.constant 0 : i32
    %c0_i32_0 = arith.constant 0 : i32
    return %arg0, %c0_i32 : i32, i32
  }
  func.func @transform_1(%arg0: i32, %arg1: i32) -> (i32, i32, i32) {
    %c0_i32 = arith.constant 0 : i32
    %c0_i32_0 = arith.constant 0 : i32
    return %arg1, %arg0, %c0_i32 : i32, i32, i32
  }
  func.func @transform_2(%arg0: i32, %arg1: i32) -> (i32, i32) {
    %c0_i32 = arith.constant 0 : i32
    %c0_i32_0 = arith.constant 0 : i32
    return %arg0, %c0_i32 : i32, i32
  }
}

</mosaic_0001>

<bundles_post_ra>
// kernel: tpu_custom_call.1
= control target key start
LH: loop header
LB: loop body
LE: loop exit
PB: predicated region body
PF: predicated region fallthrough
CT: control target
= control target key end

     0   :  { %7 = vsyncpa [#allocation6], 0  ;;  %s2990_s0 = inlined_call_operand.hbm [shape: f32[8,128], index: 0, kind: input, shape index: {}]   ;;  %s2991_s1 = inlined_call_operand.hbm [shape: f32[256,8,128], index: 1, kind: input, shape index: {}]   ;;  %s2992_s2 = inlined_call_operand.hbm [shape: f32[8,128], index: 2, kind: output, shape index: {}]  }
   0x1   :  { %8 = vsyncpa [#allocation9], 0 }
   0x2   :  { %10 = vsyncpa [#allocation9 + $0x1], 0 }
   0x3   :  { %11 = vsyncpa [#allocation7], 0  ;;  %s2004_s9 = smov 0   ;;  %s2006_s10 = smov 0  }
   0x4   :  { %s2008_s11 = smov 0   ;;  %s2010_s12 = smov 0  }
   0x5   :  { %s2012_s13 = smov 0   ;;  %s2014_s14 = smov 0  }
   0x6 LB: > { %s1483_s15 = sadd.s32 4294967295, %s1979_s14   ;;  %s64_s16 = sadd.s32 1, %s1967_s11  ;;  %s1979_s14 = sphi %s2014_s14, %s17_s14   ;;  %s1975_s13 = sphi %s2012_s13, %s3002_s13   ;;  %s1971_s12 = sphi %s2010_s12, %s3001_s12   ;;  %s1967_s11 = sphi %s2008_s11, %s3000_s11   ;;  %s1963_s10 = sphi %s2006_s10, %s2999_s10   ;;  %s1959_s9 = sphi %s2004_s9, %s2998_s9  }
   0x7   : > { %p71_p0 = scmp.ne.s32.totalorder %s1967_s11, %s1963_s10  ;;  %p72_p1 = scmp.eq.s32.totalorder %s1979_s14, 0 }
   0x8   : > { %p77_p2 = scmp.ne.s32.totalorder %s1963_s10, %s1959_s9  ;;  %p2040_p3 = scmp.eq.s32.totalorder %s1483_s15, 0 }
   0x9   : > { %p2044_p4 = por %p72_p1, %p71_p0  ;;  %p1484_p5 = scmp.ge.s32.totalorder %s1979_s14, 1 }
   0xa   : > { %p2051_p6 = por %p2040_p3, %p77_p2  ;;  %p114_p7 = scmp.lt.s32.totalorder %s1979_s14, 5 }
   0xb   : > { %s128_s22 = sshll.u32 %s2990_s0, 4  ;;  %s1981_s24 = smov [#allocation5]   ;;  %s129_s22 = int_to_ptr.hbm [resolvable:$true] %s128_s22 }
   0xc   : > { %p2059_p8 = pnand %p1484_p5, %p114_p7  ;;  %s130_s25 = sshll.u32 %s1981_s24, 4  ;;  %s131_s25 = int_to_ptr.vmem [resolvable:$true] %s130_s25 }
   0xd   : > { %p1567_p10 = scmp.lt.s32.totalorder %s1979_s14, 4  ;;  %s26_s27 = sadd.s32 1, %s1975_s13 }
   0xe   : > { %p1558_p9 = pneg %p2059_p8  ;;  %p27_p13 = scmp.ge.s32.totalorder %s26_s27, 4 }
   0xf   : > { %p2070_p12 = pnand %p1567_p10, %p2044_p4  ;;  %s141_s28 = sand.u32 1, %s1967_s11  }
  0x10   : > { %p1559_p11 = pnand %p1558_p9, %p2040_p3  ;;  %s1547_s29 = sshll.u32 %s1975_s13, 9 }
  0x11   : > { %s3004_s27 = smov (%p27_p13, %s26_s27), 0  ;;  %s1487_s30 = sshll.u32 %s141_s28, 9 }
  0x12   : > { %1561 = dma.hbm_to_vmem [thread:$0]  (!%p1559_p11), %s129_s22, 128, %s131_s25, [#allocation6]  }
  0x13   : > { %s59_s3 = ssub.s32 %s1975_s13, %s3004_s27  ;;  %s151_s6 = scalar_lea.hbm %s2991_s1, %s1547_s29 }
  0x14   : > { %p62_p0 = scmp.eq.s32.totalorder %s59_s3, 0  ;;  %s152_s7 = sshll.u32 %s151_s6, 4  ;;  %s153_s7 = int_to_ptr.hbm [resolvable:$true] %s152_s7 }
  0x15   : > { %s145_s8 = scalar_lea.vmem [#allocation8], %s1487_s30  ;;  %s142_s20 = scalar_lea.sflag [#allocation9], %s141_s28 }
  0x16   : > { %s154_s9 = sshll.u32 %s145_s8, 4  ;;  %s1982_s21 = smov 128   ;;  %s155_s9 = int_to_ptr.vmem [resolvable:$true] %s154_s9 }
  0x17   : > { %s2087_s18 = scalar_select %p62_p0, %s1967_s11, %s64_s16  }
  0x18   : > { %s1983_s22 = smov 8   ;;  %166 = sbr.rel (%p2059_p8) target bundleno = 674 (0x2a2), region = 28 }
  0x19   : > { %1565 = dma.hbm_to_vmem [thread:$0]  (!%p2070_p12), %s153_s7, 8192, %s155_s9, %s142_s20, %s1982_s21, %s1982_s21, %s1983_s22  }
  0x1d   : > { %1946 = dma.done.wait (%p2040_p3), [#allocation6], 128  }
  0x1e   : > { %1948 = vsyncadd (%p2040_p3), [#allocation6], 4294967168  ;;  %s173_s16 = sand.u32 1, %s1963_s10  }
  0x1f   : > { %s1492_s24 = sshll.u32 %s173_s16, 9  ;;  %s174_s25 = scalar_lea.sflag [#allocation9], %s173_s16 }
  0x20   : > { %s2098_s29 = scalar_lea.vmem [#allocation8], %s1492_s24 }
  0x21   : > { %1950 = dma.done.wait (%p2051_p6), %s174_s25, 8192  }
  0x22   : > { %1952 = vsyncadd (%p2051_p6), %s174_s25, 4294959104  ;;  %p1493_p1 = scmp.ne.s32.totalorder %s1971_s12, 0 }
  0x24   : > { %198 = sbr.rel (%p1493_p1) target bundleno = 45 (0x2d), region = 40 }
  0x29   : > { %vm199_vm0 = vcmask 7168   ;;  %v1984_v0 = vmov -inf   ;;  %v1985_v1 = vmov 0.0  }
  0x2a   : > { %200 = vst.msk [vmem:[#allocation2] sm:$0xff] %vm199_vm0, %v1984_v0 }
  0x2b   : > { %201 = vst.msk [vmem:[#allocation3] sm:$0xff] %vm199_vm0, %v1985_v1 }
  0x2c   : > { %202 = vst [vmem:[#allocation4] sm:$0xff] %v1985_v1 }
  0x2d PF: > { %v2105_v2 = vld [vmem:[#allocation5] sm:$0xff]  ;;  %v210_v3 = vld [vmem:[%s2098_s29 + $0x20] sm:$0xff]  ;;  %v208_v4 = vld [vmem:[%s2098_s29 + $0x10] sm:$0xff]  ;;  %vm340_vm1 = vcmask 7168   ;;  %p1542_p2 = scmp.ne.s32.totalorder %s1971_s12, 3 }
  0x2e   : > { %v226_v5 = vmul.f32 %v210_v3, %v2105_v2  ;;  %v224_v6 = vmul.f32 %v208_v4, %v2105_v2  ;;  %v206_v7 = vld [vmem:[%s2098_s29] sm:$0xff]  ;;  %v211_v9 = vld [vmem:[%s2098_s29 + $0x28] sm:$0xff]  ;;  %v209_v10 = vld [vmem:[%s2098_s29 + $0x18] sm:$0xff] }
  0x2f   : > { %v222_v8 = vmul.f32 %v206_v7, %v2105_v2  ;;  %v207_v11 = vld [vmem:[%s2098_s29 + $0x8] sm:$0xff]  ;;  %v227_v12 = vmul.f32 %v211_v9, %v2105_v2  ;;  %v225_v13 = vmul.f32 %v209_v10, %v2105_v2  ;;  %v214_v15 = vld [vmem:[%s2098_s29 + $0x40] sm:$0xff]  ;;  %v213_v16 = vld [vmem:[%s2098_s29 + $0x38] sm:$0xff] }
  0x30   : > { %246 = vadd.xlane.f32.xlu2 %v226_v5  ;;  %242 = vadd.xlane.f32.xlu1 %v224_v6  ;;  %v223_v14 = vmul.f32 %v207_v11, %v2105_v2  ;;  %v212_v17 = vld [vmem:[%s2098_s29 + $0x30] sm:$0xff]  ;;  %v230_v18 = vmul.f32 %v214_v15, %v2105_v2  ;;  %v229_v19 = vmul.f32 %v213_v16, %v2105_v2  ;;  %v217_v21 = vld [vmem:[%s2098_s29 + $0x58] sm:$0xff]  ;;  %v215_v23 = vld [vmem:[%s2098_s29 + $0x48] sm:$0xff] }
  0x31   : > { %238 = vadd.xlane.f32.xlu0 %v222_v8  ;;  %v228_v20 = vmul.f32 %v212_v17, %v2105_v2  ;;  %v216_v22 = vld [vmem:[%s2098_s29 + $0x50] sm:$0xff]  ;;  %v233_v24 = vmul.f32 %v217_v21, %v2105_v2  ;;  %v231_v26 = vmul.f32 %v215_v23, %v2105_v2  ;;  %v219_v28 = vld [vmem:[%s2098_s29 + $0x68] sm:$0xff]  ;;  %v218_v29 = vld [vmem:[%s2098_s29 + $0x60] sm:$0xff] }
  0x32   : > { %v232_v25 = vmul.f32 %v216_v22, %v2105_v2  ;;  %v220_v27 = vld [vmem:[%s2098_s29 + $0x70] sm:$0xff]  ;;  %v235_v31 = vmul.f32 %v219_v28, %v2105_v2  ;;  %v234_v32 = vmul.f32 %v218_v29, %v2105_v2  ;;  %v1494_v34 = vld [vmem:[%s2098_s29 + $0x80] sm:$0xff]  ;;  %v221_v35 = vld [vmem:[%s2098_s29 + $0x78] sm:$0xff] }
  0x33   : > { %v236_v30 = vmul.f32 %v220_v27, %v2105_v2  ;;  %v1496_v33 = vld [vmem:[%s2098_s29 + $0x90] sm:$0xff]  ;;  %v513_v37 = vmul.f32 %v1494_v34, %v2105_v2  ;;  %v237_v38 = vmul.f32 %v221_v35, %v2105_v2  ;;  %v1498_v39 = vld [vmem:[%s2098_s29 + $0xa0] sm:$0xff]  ;;  %v1497_v40 = vld [vmem:[%s2098_s29 + $0x98] sm:$0xff] }
  0x34   : > { %v515_v36 = vmul.f32 %v1496_v33, %v2105_v2  ;;  %v1495_v41 = vld [vmem:[%s2098_s29 + $0x88] sm:$0xff]  ;;  %v517_v42 = vmul.f32 %v1498_v39, %v2105_v2  ;;  %v516_v43 = vmul.f32 %v1497_v40, %v2105_v2  ;;  %v1501_v45 = vld [vmem:[%s2098_s29 + $0xb8] sm:$0xff]  ;;  %v1500_v46 = vld [vmem:[%s2098_s29 + $0xb0] sm:$0xff] }
  0x35   : > { %v514_v44 = vmul.f32 %v1495_v41, %v2105_v2  ;;  %v1499_v47 = vld [vmem:[%s2098_s29 + $0xa8] sm:$0xff]  ;;  %v520_v48 = vmul.f32 %v1501_v45, %v2105_v2  ;;  %v519_v49 = vmul.f32 %v1500_v46, %v2105_v2  ;;  %v1504_v51 = vld [vmem:[%s2098_s29 + $0xd0] sm:$0xff]  ;;  %v1502_v53 = vld [vmem:[%s2098_s29 + $0xc0] sm:$0xff] }
  0x36   : > { %v518_v50 = vmul.f32 %v1499_v47, %v2105_v2  ;;  %v1503_v52 = vld [vmem:[%s2098_s29 + $0xc8] sm:$0xff]  ;;  %v523_v54 = vmul.f32 %v1504_v51, %v2105_v2  ;;  %v521_v56 = vmul.f32 %v1502_v53, %v2105_v2  ;;  %v1506_v58 = vld [vmem:[%s2098_s29 + $0xe0] sm:$0xff]  ;;  %v1505_v59 = vld [vmem:[%s2098_s29 + $0xd8] sm:$0xff] }
  0x37   : > { %v522_v55 = vmul.f32 %v1503_v52, %v2105_v2  ;;  %v1507_v57 = vld [vmem:[%s2098_s29 + $0xe8] sm:$0xff]  ;;  %v525_v61 = vmul.f32 %v1506_v58, %v2105_v2  ;;  %v524_v62 = vmul.f32 %v1505_v59, %v2105_v2  ;;  %v1512_v63 = vld [vmem:[%s2098_s29 + $0x110] sm:$0xff]  ;;  %v1509_v0 = vld [vmem:[%s2098_s29 + $0xf8] sm:$0xff] }
  0x38   : > { %248 = vadd.xlane.f32.xlu2 %v227_v12  ;;  %244 = vadd.xlane.f32.xlu1 %v225_v13  ;;  %v526_v60 = vmul.f32 %v1507_v57, %v2105_v2  ;;  %v1508_v1 = vld [vmem:[%s2098_s29 + $0xf0] sm:$0xff]  ;;  %v805_v3 = vmul.f32 %v1512_v63, %v2105_v2  ;;  %v528_v4 = vmul.f32 %v1509_v0, %v2105_v2  ;;  %v1515_v6 = vld [vmem:[%s2098_s29 + $0x128] sm:$0xff]  ;;  %v1510_v7 = vld [vmem:[%s2098_s29 + $0x100] sm:$0xff] }
  0x39   : > { %240 = vadd.xlane.f32.xlu0 %v223_v14  ;;  %v527_v5 = vmul.f32 %v1508_v1, %v2105_v2  ;;  %v1511_v8 = vld [vmem:[%s2098_s29 + $0x108] sm:$0xff]  ;;  %v808_v9 = vmul.f32 %v1515_v6, %v2105_v2  ;;  %v803_v10 = vmul.f32 %v1510_v7, %v2105_v2  ;;  %v1518_v12 = vld [vmem:[%s2098_s29 + $0x140] sm:$0xff]  ;;  %v1513_v13 = vld [vmem:[%s2098_s29 + $0x118] sm:$0xff] }
  0x3a   : > { %v804_v11 = vmul.f32 %v1511_v8, %v2105_v2  ;;  %v1514_v14 = vld [vmem:[%s2098_s29 + $0x120] sm:$0xff]  ;;  %v811_v15 = vmul.f32 %v1518_v12, %v2105_v2  ;;  %v806_v16 = vmul.f32 %v1513_v13, %v2105_v2  ;;  %v1531_v39 = vld [vmem:[%s2098_s29 + $0x1a8] sm:$0xff]  ;;  %v1525_v40 = vld [vmem:[%s2098_s29 + $0x178] sm:$0xff] }
  0x3b   : > { %v807_v17 = vmul.f32 %v1514_v14, %v2105_v2  ;;  %v1526_v41 = vld [vmem:[%s2098_s29 + $0x180] sm:$0xff]  ;;  %v1098_v45 = vmul.f32 %v1531_v39, %v2105_v2  ;;  %v818_v46 = vmul.f32 %v1525_v40, %v2105_v2  ;;  %v1537_v57 = vld [vmem:[%s2098_s29 + $0x1d8] sm:$0xff]  ;;  %v1532_v59 = vld [vmem:[%s2098_s29 + $0x1b0] sm:$0xff]  ;;  %v1986_v39 = vmov 0  }
  0x3c   : > { %v1093_v47 = vmul.f32 %v1526_v41, %v2105_v2  ;;  %v1530_v58 = vld [vmem:[%s2098_s29 + $0x1a0] sm:$0xff]  ;;  %v1104_v63 = vmul.f32 %v1537_v57, %v2105_v2  ;;  %v1099_v1 = vmul.f32 %v1532_v59, %v2105_v2  ;;  %1628 = vset.pattern.permute.xlu2 %v1986_v39  ;;  %v1541_v40 = vld [vmem:[%s2098_s29 + $0x1f8] sm:$0xff]  ;;  %1629 = vset.pattern.permute.xlu0 %v1986_v39 }
  0x3d   : > { %v1097_v0 = vmul.f32 %v1530_v58, %v2105_v2  ;;  %1627 = vset.pattern.permute.xlu1 %v1986_v39 }
  0x40   : > { %254 = vadd.xlane.f32.xlu2 %v230_v18  ;;  %252 = vadd.xlane.f32.xlu1 %v229_v19  ;;  %v1521_v18 = vld [vmem:[%s2098_s29 + $0x158] sm:$0xff]  ;;  %v1516_v19 = vld [vmem:[%s2098_s29 + $0x130] sm:$0xff] }
  0x41   : > { %250 = vadd.xlane.f32.xlu0 %v228_v20  ;;  %v1517_v20 = vld [vmem:[%s2098_s29 + $0x138] sm:$0xff]  ;;  %v814_v21 = vmul.f32 %v1521_v18, %v2105_v2  ;;  %v809_v22 = vmul.f32 %v1516_v19, %v2105_v2  ;;  %v1536_v18 = vld [vmem:[%s2098_s29 + $0x1d0] sm:$0xff]  ;;  %v1538_v19 = vld [vmem:[%s2098_s29 + $0x1e0] sm:$0xff] }
  0x42   : > { %v810_v23 = vmul.f32 %v1517_v20, %v2105_v2 }
  0x48   : > { %260 = vadd.xlane.f32.xlu2 %v233_v24  ;;  %258 = vadd.xlane.f32.xlu1 %v232_v25  ;;  %v1524_v24 = vld [vmem:[%s2098_s29 + $0x170] sm:$0xff]  ;;  %v1519_v25 = vld [vmem:[%s2098_s29 + $0x148] sm:$0xff] }
  0x49   : > { %256 = vadd.xlane.f32.xlu0 %v231_v26  ;;  %v1520_v26 = vld [vmem:[%s2098_s29 + $0x150] sm:$0xff]  ;;  %v817_v27 = vmul.f32 %v1524_v24, %v2105_v2  ;;  %v812_v28 = vmul.f32 %v1519_v25, %v2105_v2 }
  0x4a   : > { %v813_v29 = vmul.f32 %v1520_v26, %v2105_v2 }
  0x50   : > { %266 = vadd.xlane.f32.xlu2 %v236_v30  ;;  %264 = vadd.xlane.f32.xlu1 %v235_v31  ;;  %v1528_v30 = vld [vmem:[%s2098_s29 + $0x190] sm:$0xff]  ;;  %v1522_v31 = vld [vmem:[%s2098_s29 + $0x160] sm:$0xff] }
  0x51   : > { %262 = vadd.xlane.f32.xlu0 %v234_v32  ;;  %v1523_v32 = vld [vmem:[%s2098_s29 + $0x168] sm:$0xff] }
  0x58   : > { %533 = vadd.xlane.f32.xlu2 %v515_v36  ;;  %529 = vadd.xlane.f32.xlu1 %v513_v37  ;;  %v1095_v36 = vmul.f32 %v1528_v30, %v2105_v2  ;;  %v815_v37 = vmul.f32 %v1522_v31, %v2105_v2  ;;  %v1105_v30 = vmul.f32 %v1538_v19, %v2105_v2 }
  0x59   : > { %268 = vadd.xlane.f32.xlu0 %v237_v38  ;;  %v816_v38 = vmul.f32 %v1523_v32, %v2105_v2 }
  0x60   : > { %537 = vadd.xlane.f32.xlu2 %v517_v42  ;;  %535 = vadd.xlane.f32.xlu1 %v516_v43 }
  0x61   : > { %531 = vadd.xlane.f32.xlu0 %v514_v44 }
  0x68   : > { %543 = vadd.xlane.f32.xlu2 %v520_v48  ;;  %541 = vadd.xlane.f32.xlu1 %v519_v49  ;;  %v1534_v48 = vld [vmem:[%s2098_s29 + $0x1c0] sm:$0xff]  ;;  %v1527_v49 = vld [vmem:[%s2098_s29 + $0x188] sm:$0xff] }
  0x69   : > { %539 = vadd.xlane.f32.xlu0 %v518_v50  ;;  %v1529_v50 = vld [vmem:[%s2098_s29 + $0x198] sm:$0xff] }
  0x70   : > { %549 = vadd.xlane.f32.xlu2 %v523_v54  ;;  %547 = vadd.xlane.f32.xlu1 %v522_v55  ;;  %v1101_v54 = vmul.f32 %v1534_v48, %v2105_v2  ;;  %v1094_v55 = vmul.f32 %v1527_v49, %v2105_v2 }
  0x71   : > { %545 = vadd.xlane.f32.xlu0 %v521_v56  ;;  %v1096_v56 = vmul.f32 %v1529_v50, %v2105_v2  ;;  %v1108_v50 = vmul.f32 %v1541_v40, %v2105_v2 }
  0x78   : > { %555 = vadd.xlane.f32.xlu2 %v526_v60  ;;  %553 = vadd.xlane.f32.xlu1 %v525_v61 }
  0x79   : > { %551 = vadd.xlane.f32.xlu0 %v524_v62 }
  0x80   : > { %823 = vadd.xlane.f32.xlu2 %v805_v3  ;;  %559 = vadd.xlane.f32.xlu1 %v528_v4  ;;  %v1540_v3 = vld [vmem:[%s2098_s29 + $0x1f0] sm:$0xff]  ;;  %v1533_v4 = vld [vmem:[%s2098_s29 + $0x1b8] sm:$0xff] }
  0x81   : > { %557 = vadd.xlane.f32.xlu0 %v527_v5  ;;  %v1535_v5 = vld [vmem:[%s2098_s29 + $0x1c8] sm:$0xff] }
  0x88   : > { %829 = vadd.xlane.f32.xlu2 %v808_v9  ;;  %819 = vadd.xlane.f32.xlu1 %v803_v10  ;;  %v1107_v9 = vmul.f32 %v1540_v3, %v2105_v2  ;;  %v1100_v10 = vmul.f32 %v1533_v4, %v2105_v2 }
  0x89   : > { %821 = vadd.xlane.f32.xlu0 %v804_v11  ;;  %v1102_v11 = vmul.f32 %v1535_v5, %v2105_v2 }
  0x90   : > { %835 = vadd.xlane.f32.xlu2 %v811_v15  ;;  %825 = vadd.xlane.f32.xlu1 %v806_v16 }
  0x91   : > { %827 = vadd.xlane.f32.xlu0 %v807_v17 }
  0x98   : > { %841 = vadd.xlane.f32.xlu2 %v814_v21  ;;  %831 = vadd.xlane.f32.xlu1 %v809_v22 }
  0x99   : > { %833 = vadd.xlane.f32.xlu0 %v810_v23 }
  0xa0   : > { %847 = vadd.xlane.f32.xlu2 %v817_v27  ;;  %837 = vadd.xlane.f32.xlu1 %v812_v28  ;;  %v1103_v27 = vmul.f32 %v1536_v18, %v2105_v2 }
  0xa1   : > { %839 = vadd.xlane.f32.xlu0 %v813_v29 }
  0xa3   : > { %v2200_v33 = vpop.xlane.xlu2 %246  ;;  %v2202_v34 = vpop.xlane.xlu1 %242 }
  0xa4   : > { %v2204_v35 = vpop.xlane.xlu0 %238 }
  0xa5   : > { %v271_v12 = vmax.f32 %v2204_v35, %v2200_v33 }
  0xa8   : > { %1113 = vadd.xlane.f32.xlu2 %v1095_v36  ;;  %843 = vadd.xlane.f32.xlu1 %v815_v37  ;;  %v270_v36 = vld [vmem:[#allocation2] sm:$0xff] }
  0xa9   : > { %845 = vadd.xlane.f32.xlu0 %v816_v38  ;;  %v1539_v38 = vld [vmem:[%s2098_s29 + $0x1e8] sm:$0xff] }
  0xaa   : > { %v1106_v48 = vmul.f32 %v1539_v38, %v2105_v2 }
  0xab   : > { %v2212_v42 = vpop.xlane.xlu2 %248  ;;  %v2214_v43 = vpop.xlane.xlu1 %244 }
  0xac   : > { %v2216_v44 = vpop.xlane.xlu0 %240 }
  0xad   : > { %v272_v13 = vmax.f32 %v2216_v44, %v2212_v42 }
  0xb0   : > { %1119 = vadd.xlane.f32.xlu2 %v1098_v45  ;;  %849 = vadd.xlane.f32.xlu1 %v818_v46 }
  0xb1   : > { %1109 = vadd.xlane.f32.xlu0 %v1093_v47 }
  0xb3   : > { %v2224_v51 = vpop.xlane.xlu2 %254  ;;  %v2226_v52 = vpop.xlane.xlu1 %252 }
  0xb4   : > { %v2228_v53 = vpop.xlane.xlu0 %250  ;;  %v275_v14 = vmax.f32 %v271_v12, %v2224_v51  ;;  %v274_v15 = vmax.f32 %v2214_v43, %v2226_v52 }
  0xb5   : > { %v273_v16 = vmax.f32 %v2202_v34, %v2228_v53 }
  0xb8   : > { %1125 = vadd.xlane.f32.xlu2 %v1101_v54  ;;  %1111 = vadd.xlane.f32.xlu1 %v1094_v55 }
  0xb9   : > { %1115 = vadd.xlane.f32.xlu0 %v1096_v56 }
  0xbb   : > { %v2236_v60 = vpop.xlane.xlu2 %260  ;;  %v2238_v61 = vpop.xlane.xlu1 %258 }
  0xbc   : > { %v2240_v62 = vpop.xlane.xlu0 %256  ;;  %v278_v20 = vmax.f32 %v274_v15, %v2236_v60  ;;  %v277_v21 = vmax.f32 %v273_v16, %v2238_v61 }
  0xbd   : > { %v276_v17 = vmax.f32 %v272_v13, %v2240_v62 }
  0xc0   : > { %1131 = vadd.xlane.f32.xlu2 %v1104_v63  ;;  %1117 = vadd.xlane.f32.xlu1 %v1097_v0 }
  0xc1   : > { %1121 = vadd.xlane.f32.xlu0 %v1099_v1 }
  0xc3   : > { %v2248_v6 = vpop.xlane.xlu2 %266  ;;  %v2250_v7 = vpop.xlane.xlu1 %264 }
  0xc4   : > { %v2252_v8 = vpop.xlane.xlu0 %262  ;;  %v280_v22 = vmax.f32 %v276_v17, %v2250_v7  ;;  %v281_v28 = vmax.f32 %v277_v21, %v2248_v6 }
  0xc5   : > { %v279_v23 = vmax.f32 %v275_v14, %v2252_v8 }
  0xc7   : > { %v283_v31 = vmax.f32 %v279_v23, %v280_v22 }
  0xc8   : > { %1137 = vadd.xlane.f32.xlu2 %v1107_v9  ;;  %1123 = vadd.xlane.f32.xlu1 %v1100_v10 }
  0xc9   : > { %1127 = vadd.xlane.f32.xlu0 %v1102_v11 }
  0xcb   : > { %v2273_v24 = vpop.xlane.xlu2 %533  ;;  %v2275_v25 = vpop.xlane.xlu1 %529 }
  0xcc   : > { %v2277_v26 = vpop.xlane.xlu0 %268 }
  0xcd   : > { %v282_v29 = vmax.f32 %v278_v20, %v2277_v26 }
  0xcf   : > { %v284_v32 = vmax.f32 %v281_v28, %v282_v29 }
  0xd0   : > { %1129 = vadd.xlane.f32.xlu1 %v1103_v27 }
  0xd1   : > { %v285_v37 = vmax.f32 %v283_v31, %v284_v32  ;;  %1133 = vadd.xlane.f32.xlu0 %v1105_v30 }
  0xd3   : > { %v2285_v41 = vmax.f32 %v270_v36, %v285_v37  ;;  %v2287_v45 = vpop.xlane.xlu2 %537  ;;  %v2289_v46 = vpop.xlane.xlu1 %535 }
  0xd4   : > { %v2291_v47 = vpop.xlane.xlu0 %531 }
  0xd5   : > { %v290_v49 = vsub.f32 %v2204_v35, %v2285_v41  ;;  %494 = vst.msk [vmem:[#allocation2] sm:$0xff] %vm340_vm1, %v2285_v41  ;;  %v291_v54 = vsub.f32 %v2216_v44, %v2285_v41  ;;  %v292_v55 = vsub.f32 %v2202_v34, %v2285_v41  ;;  %v293_v56 = vsub.f32 %v2214_v43, %v2285_v41 }
  0xd6   : > { %v294_v57 = vsub.f32 %v2200_v33, %v2285_v41  ;;  %v295_v35 = vsub.f32 %v2212_v42, %v2285_v41  ;;  %v296_v34 = vsub.f32 %v2228_v53, %v2285_v41  ;;  %v297_v1 = vsub.f32 %v2226_v52, %v2285_v41 }
  0xd7   : > { %v306_v58 = vmul.f32 1.442695, %v290_v49  ;;  %v308_v59 = vmul.f32 1.442695, %v291_v54  ;;  %v310_v2 = vmul.f32 1.442695, %v292_v55  ;;  %v298_v3 = vsub.f32 %v2224_v51, %v2285_v41 }
  0xd8   : > { %1135 = vadd.xlane.f32.xlu1 %v1106_v48  ;;  %v312_v63 = vmul.f32 1.442695, %v293_v56  ;;  %v314_v43 = vmul.f32 1.442695, %v294_v57  ;;  %v316_v42 = vmul.f32 1.442695, %v295_v35  ;;  %v287_v9 = vsub.f32 %v270_v36, %v2285_v41 }
  0xd9   : > { %1139 = vadd.xlane.f32.xlu0 %v1108_v50  ;;  %1630 = vpow2.f32 %v306_v58  ;;  %v318_v4 = vmul.f32 1.442695, %v296_v34  ;;  %v299_v53 = vsub.f32 %v2240_v62, %v2285_v41  ;;  %v320_v11 = vmul.f32 1.442695, %v297_v1 }
  0xda   : > { %1632 = vpow2.f32 %v308_v59  ;;  %v300_v16 = vsub.f32 %v2238_v61, %v2285_v41  ;;  %v322_v17 = vmul.f32 1.442695, %v298_v3  ;;  %v288_v19 = vmul.f32 1.442695, %v287_v9 }
  0xdb   : > { %v2309_v44 = vpop.xlane.xlu2 %543  ;;  %v2311_v0 = vpop.xlane.xlu1 %541  ;;  %1634 = vpow2.f32 %v310_v2  ;;  %v301_v22 = vsub.f32 %v2236_v60, %v2285_v41  ;;  %v324_v23 = vmul.f32 1.442695, %v299_v53  ;;  %v302_v61 = vsub.f32 %v2252_v8, %v2285_v41 }
  0xdc   : > { %v2315_v33 = vpop.xlane.xlu0 %539  ;;  %1636 = vpow2.f32 %v312_v63  ;;  %v326_v30 = vmul.f32 1.442695, %v300_v16  ;;  %v303_v60 = vsub.f32 %v2250_v7, %v2285_v41  ;;  %v304_v49 = vsub.f32 %v2248_v6, %v2285_v41 }
  0xdd   : > { %1638 = vpow2.f32 %v314_v43  ;;  %v328_v37 = vmul.f32 1.442695, %v301_v22  ;;  %v330_v50 = vmul.f32 1.442695, %v302_v61  ;;  %v305_v57 = vsub.f32 %v2277_v26, %v2285_v41 }
  0xde   : > { %1640 = vpow2.f32 %v316_v42  ;;  %v332_v58 = vmul.f32 1.442695, %v303_v60  ;;  %v562_v2 = vmax.f32 %v2275_v25, %v2287_v45  ;;  %v563_v63 = vmax.f32 %v2291_v47, %v2315_v33 }
  0xdf   : > { %v1631_v5 = vpop.eup %1630  ;;  %1642 = vpow2.f32 %v318_v4  ;;  %v334_v43 = vmul.f32 1.442695, %v304_v49  ;;  %v565_v26 = vmax.f32 %v2289_v46, %v2309_v44  ;;  %v564_v42 = vmax.f32 %v2273_v24, %v2311_v0 }
  0xe0   : > { %v1633_v10 = vpop.eup %1632  ;;  %v341_v12 = vsel %vm340_vm1, %v1631_v5, 0.0  ;;  %383 = vperm.xlu2 %1628, %v1631_v5   ;;  %1644 = vpow2.f32 %v320_v11  ;;  %v336_v9 = vmul.f32 1.442695, %v305_v57 }
  0xe1   : > { %v1635_v52 = vpop.eup %1634  ;;  %v342_v13 = vsel %vm340_vm1, %v1633_v10, 0.0  ;;  %1646 = vpow2.f32 %v322_v17 }
  0xe2   : > { %v2330_v15 = vpop.eup %1636  ;;  %v343_v62 = vadd.f32 %v342_v13, %v341_v12  ;;  %v344_v20 = vsel %vm340_vm1, %v1635_v52, 0.0  ;;  %1648 = vpow2.f32 %v288_v19 }
  0xe3   : > { %v2326_v14 = vpop.xlane.xlu2 %549  ;;  %v2328_v51 = vpop.xlane.xlu1 %547  ;;  %v346_v28 = vsel %vm340_vm1, %v2330_v15, 0.0  ;;  %1650 = vpow2.f32 %v324_v23 }
  0xe4   : > { %v2334_v18 = vpop.xlane.xlu0 %545  ;;  %v1639_v21 = vpop.eup %1638  ;;  %v345_v27 = vadd.f32 %v344_v20, %v343_v62  ;;  %1652 = vpow2.f32 %v326_v30  ;;  %v567_v3 = vmax.f32 %v563_v63, %v2328_v51  ;;  %v568_v12 = vmax.f32 %v564_v42, %v2326_v14 }
  0xe5   : > { %v2341_v29 = vpop.eup %1640  ;;  %v348_v32 = vsel %vm340_vm1, %v1639_v21, 0.0  ;;  %1654 = vpow2.f32 %v328_v37  ;;  %v566_v4 = vmax.f32 %v562_v2, %v2334_v18 }
  0xe6   : > { %v347_v31 = vadd.f32 %v346_v28, %v345_v27  ;;  %v2346_v36 = vpop.eup %1642  ;;  %v350_v39 = vsel %vm340_vm1, %v2341_v29, 0.0  ;;  %1656 = vpow2.f32 %v330_v50  ;;  %v2407_v50 = vld [vmem:[#allocation2] sm:$0xff] }
  0xe7   : > { %v2356_v48 = vpop.eup %1644  ;;  %v352_v55 = vsel %vm340_vm1, %v2346_v36, 0.0  ;;  %1658 = vpow2.f32 %v332_v58 }
  0xe8   : > { %v349_v38 = vadd.f32 %v348_v32, %v347_v31  ;;  %393 = vperm.xlu2 %1628, %v1635_v52   ;;  %v1647_v56 = vpop.eup %1646  ;;  %v354_v6 = vsel %vm340_vm1, %v2356_v48, 0.0  ;;  %1660 = vpow2.f32 %v334_v43 }
  0xe9   : > { %v2366_v59 = vpop.eup %1648  ;;  %v356_v41 = vsel %vm340_vm1, %v1647_v56, 0.0  ;;  %1662 = vpow2.f32 %v336_v9 }
  0xea   : > { %v351_v54 = vadd.f32 %v350_v39, %v349_v38  ;;  %v2374_v34 = vpop.eup %1650 }
  0xeb   : > { %v2352_v40 = vpop.xlane.xlu2 %555  ;;  %v2354_v8 = vpop.xlane.xlu1 %553  ;;  %v358_v11 = vsel %vm340_vm1, %v2374_v34, 0.0 }
  0xec   : > { %v2360_v7 = vpop.xlane.xlu0 %551  ;;  %v353_v35 = vadd.f32 %v352_v55, %v351_v54  ;;  %v2384_v5 = vpop.eup %1652  ;;  %v571_v52 = vmax.f32 %v567_v3, %v2352_v40  ;;  %v570_v13 = vmax.f32 %v566_v4, %v2354_v8 }
  0xed   : > { %388 = vperm.xlu0 %1629, %v1633_v10   ;;  %v569_v53 = vmax.f32 %v565_v26, %v2360_v7  ;;  %v1655_v62 = vpop.eup %1654 }
  0xee   : > { %v355_v1 = vadd.f32 %v354_v6, %v353_v35  ;;  %v1657_v27 = vpop.eup %1656  ;;  %v362_v61 = vsel %vm340_vm1, %v1655_v62, 0.0  ;;  %v574_v30 = vmax.f32 %v570_v13, %v571_v52  ;;  %v338_v6 = vld [vmem:[#allocation3] sm:$0xff] }
  0xef   : > { %v2403_v32 = vpop.eup %1658  ;;  %v364_v37 = vsel %vm340_vm1, %v1657_v27, 0.0  ;;  %v339_v42 = vmul.f32 %v2366_v59, %v338_v6 }
  0xf0   : > { %v357_v10 = vadd.f32 %v356_v41, %v355_v1  ;;  %403 = vperm.xlu2 %1628, %v1639_v21   ;;  %v360_v21 = vsel %vm340_vm1, %v2384_v5, 0.0  ;;  %v1661_v39 = vpop.eup %1660  ;;  %v366_v54 = vsel %vm340_vm1, %v2403_v32, 0.0 }
  0xf1   : > { %377 = vperm.xlu1 %1627, %v2366_v59   ;;  %v2419_v58 = vpop.eup %1662  ;;  %v368_v2 = vsel %vm340_vm1, %v1661_v39, 0.0 }
  0xf2   : > { %v359_v19 = vadd.f32 %v358_v11, %v357_v10  ;;  %v370_v1 = vsel %vm340_vm1, %v2419_v58, 0.0 }
  0xf3   : > { %v2392_v16 = vpop.xlane.xlu2 %823  ;;  %v2394_v17 = vpop.xlane.xlu1 %559 }
  0xf4   : > { %v573_v20 = vmax.f32 %v569_v53, %v2394_v17  ;;  %v2397_v22 = vpop.xlane.xlu0 %557  ;;  %v361_v28 = vadd.f32 %v360_v21, %v359_v19 }
  0xf5   : > { %v572_v23 = vmax.f32 %v568_v12, %v2397_v22  ;;  %423 = vperm.xlu0 %1629, %v1647_v56  }
  0xf6   : > { %v363_v60 = vadd.f32 %v362_v61, %v361_v28 }
  0xf7   : > { %v575_v31 = vmax.f32 %v572_v23, %v573_v20 }
  0xf8   : > { %v365_v49 = vadd.f32 %v364_v37, %v363_v60  ;;  %413 = vperm.xlu2 %1628, %v2346_v36  }
  0xf9   : > { %v576_v38 = vmax.f32 %v574_v30, %v575_v31  ;;  %398 = vperm.xlu1 %1627, %v2330_v15  }
  0xfa   : > { %v367_v35 = vadd.f32 %v366_v54, %v365_v49 }
  0xfb   : > { %v2413_v55 = vmax.f32 %v2407_v50, %v576_v38  ;;  %v2415_v56 = vpop.xlane.xlu2 %829  ;;  %v2417_v57 = vpop.xlane.xlu1 %819 }
  0xfc   : > { %v2421_v15 = vpop.xlane.xlu0 %821  ;;  %v369_v36 = vadd.f32 %v368_v2, %v367_v35 }
  0xfd   : > { %784 = vst.msk [vmem:[#allocation2] sm:$0xff] %vm340_vm1, %v2413_v55  ;;  %v581_v63 = vsub.f32 %v2275_v25, %v2413_v55  ;;  %v582_v43 = vsub.f32 %v2291_v47, %v2413_v55  ;;  %438 = vperm.xlu0 %1629, %v1655_v62   ;;  %v583_v26 = vsub.f32 %v2273_v24, %v2413_v55 }
  0xfe   : > { %v584_v41 = vsub.f32 %v2289_v46, %v2413_v55  ;;  %v371_v3 = vadd.f32 %v370_v1, %v369_v36  ;;  %v585_v4 = vsub.f32 %v2287_v45, %v2413_v55  ;;  %v586_v10 = vsub.f32 %v2315_v33, %v2413_v55 }
  0xff   : > { %v597_v47 = vmul.f32 1.442695, %v581_v63  ;;  %v599_v9 = vmul.f32 1.442695, %v582_v43  ;;  %v601_v24 = vmul.f32 1.442695, %v583_v26  ;;  %v588_v33 = vsub.f32 %v2309_v44, %v2413_v55 }
 0x100   : > { %v372_v25 = vadd.f32 %v371_v3, %v339_v42  ;;  %428 = vperm.xlu2 %1628, %v2374_v34   ;;  %v603_v53 = vmul.f32 1.442695, %v584_v41  ;;  %v605_v59 = vmul.f32 1.442695, %v585_v4  ;;  %v607_v34 = vmul.f32 1.442695, %v586_v10 }
 0x101   : > { %408 = vperm.xlu1 %1627, %v2341_v29   ;;  %1664 = vpow2.f32 %v597_v47  ;;  %v587_v29 = vsub.f32 %v2311_v0, %v2413_v55  ;;  %v589_v12 = vsub.f32 %v2334_v18, %v2413_v55  ;;  %v578_v0 = vsub.f32 %v2407_v50, %v2413_v55 }
 0x102   : > { %373 = vst.msk [vmem:[#allocation3] sm:$0xff] %vm340_vm1, %v372_v25  ;;  %1666 = vpow2.f32 %v599_v9  ;;  %v590_v19 = vsub.f32 %v2328_v51, %v2413_v55  ;;  %v611_v44 = vmul.f32 1.442695, %v588_v33  ;;  %v591_v61 = vsub.f32 %v2326_v14, %v2413_v55 }
 0x103   : > { %v2443_v11 = vpop.xlane.xlu2 %835  ;;  %v2445_v46 = vpop.xlane.xlu1 %825  ;;  %1668 = vpow2.f32 %v601_v24  ;;  %v609_v52 = vmul.f32 1.442695, %v587_v29  ;;  %v613_v51 = vmul.f32 1.442695, %v589_v12  ;;  %v579_v31 = vmul.f32 1.442695, %v578_v0 }
 0x104   : > { %v2448_v45 = vpop.xlane.xlu0 %827  ;;  %1670 = vpow2.f32 %v603_v53  ;;  %v592_v38 = vsub.f32 %v2360_v7, %v2413_v55  ;;  %v593_v14 = vsub.f32 %v2354_v8, %v2413_v55  ;;  %v617_v35 = vmul.f32 1.442695, %v591_v61 }
 0x105   : > { %453 = vperm.xlu0 %1629, %v1661_v39   ;;  %1672 = vpow2.f32 %v605_v59  ;;  %v615_v39 = vmul.f32 1.442695, %v590_v19  ;;  %v594_v36 = vsub.f32 %v2352_v40, %v2413_v55  ;;  %v596_v25 = vsub.f32 %v2394_v17, %v2413_v55 }
 0x106   : > { %1674 = vpow2.f32 %v607_v34  ;;  %v619_v63 = vmul.f32 1.442695, %v592_v38  ;;  %v621_v42 = vmul.f32 1.442695, %v593_v14 }
 0x107   : > { %v1665_v13 = vpop.eup %1664  ;;  %1676 = vpow2.f32 %v609_v52  ;;  %v623_v47 = vmul.f32 1.442695, %v594_v36  ;;  %v627_v17 = vmul.f32 1.442695, %v596_v25 }
 0x108   : > { %443 = vperm.xlu2 %1628, %v1657_v27   ;;  %v2459_v62 = vpop.eup %1666  ;;  %v631_v20 = vsel %vm340_vm1, %v1665_v13, 0.0  ;;  %1678 = vpow2.f32 %v611_v44 }
 0x109   : > { %418 = vperm.xlu1 %1627, %v2356_v48   ;;  %v1669_v23 = vpop.eup %1668  ;;  %v632_v48 = vsel %vm340_vm1, %v2459_v62, 0.0  ;;  %1680 = vpow2.f32 %v613_v51 }
 0x10a   : > { %v2472_v27 = vpop.eup %1670  ;;  %v633_v30 = vadd.f32 %v632_v48, %v631_v20  ;;  %v634_v60 = vsel %vm340_vm1, %v1669_v23, 0.0  ;;  %1682 = vpow2.f32 %v579_v31  ;;  %v853_v20 = vmax.f32 %v2421_v15, %v2415_v56 }
 0x10b   : > { %v2464_v21 = vpop.xlane.xlu2 %841  ;;  %v2466_v18 = vpop.xlane.xlu1 %831  ;;  %v636_v50 = vsel %vm340_vm1, %v2472_v27, 0.0  ;;  %1684 = vpow2.f32 %v615_v39 }
 0x10c   : > { %v2470_v28 = vpop.xlane.xlu0 %833  ;;  %v2477_v37 = vpop.eup %1672  ;;  %v635_v49 = vadd.f32 %v634_v60, %v633_v30  ;;  %1686 = vpow2.f32 %v617_v35 }
 0x10d   : > { %673 = vperm.xlu0 %1629, %v1665_v13   ;;  %v1675_v54 = vpop.eup %1674  ;;  %v638_v2 = vsel %vm340_vm1, %v2477_v37, 0.0  ;;  %1688 = vpow2.f32 %v619_v63  ;;  %v852_v13 = vmax.f32 %v2417_v57, %v2448_v45  ;;  %v855_v48 = vmax.f32 %v2445_v46, %v2470_v28 }
 0x10e   : > { %v637_v6 = vadd.f32 %v636_v50, %v635_v49  ;;  %v2489_v7 = vpop.eup %1676  ;;  %1690 = vpow2.f32 %v621_v42 }
 0x10f   : > { %v2500_v41 = vpop.eup %1678  ;;  %v642_v40 = vsel %vm340_vm1, %v2489_v7, 0.0  ;;  %1692 = vpow2.f32 %v623_v47  ;;  %v856_v38 = vmax.f32 %v852_v13, %v2443_v11  ;;  %v859_v35 = vmax.f32 %v855_v48, %v2464_v21 }
 0x110   : > { %458 = vperm.xlu2 %1628, %v2419_v58   ;;  %v639_v43 = vadd.f32 %v638_v2, %v637_v6  ;;  %v595_v58 = vsub.f32 %v2397_v22, %v2413_v55  ;;  %v1681_v4 = vpop.eup %1680  ;;  %v644_v24 = vsel %vm340_vm1, %v2500_v41, 0.0 }
 0x111   : > { %433 = vperm.xlu1 %1627, %v2384_v5   ;;  %v640_v5 = vsel %vm340_vm1, %v1675_v54, 0.0  ;;  %v1683_v10 = vpop.eup %1682  ;;  %v646_v59 = vsel %vm340_vm1, %v1681_v4, 0.0 }
 0x112   : > { %v641_v3 = vadd.f32 %v640_v5, %v639_v43  ;;  %v2510_v53 = vpop.eup %1684  ;;  %v625_v22 = vmul.f32 1.442695, %v595_v58 }
 0x113   : > { %v2493_v8 = vpop.xlane.xlu2 %847  ;;  %v2495_v1 = vpop.xlane.xlu1 %837  ;;  %v648_v52 = vsel %vm340_vm1, %v2510_v53, 0.0 }
 0x114   : > { %v2498_v26 = vpop.xlane.xlu0 %839  ;;  %v643_v9 = vadd.f32 %v642_v40, %v641_v3  ;;  %v2514_v33 = vpop.eup %1686  ;;  %1694 = vpow2.f32 %v625_v22  ;;  %v857_v31 = vmax.f32 %v853_v20, %v2495_v1  ;;  %v629_v3 = vld [vmem:[#allocation3] sm:$0xff] }
 0x115   : > { %683 = vperm.xlu0 %1629, %v1669_v23   ;;  %v650_v44 = vsel %vm340_vm1, %v2514_v33, 0.0  ;;  %v854_v23 = vmax.f32 %v2392_v16, %v2466_v18  ;;  %1696 = vpow2.f32 %v627_v17  ;;  %v851_v17 = vld [vmem:[#allocation2] sm:$0xff] }
 0x116   : > { %v645_v29 = vadd.f32 %v644_v24, %v643_v9 }
 0x117   : > { %v858_v60 = vmax.f32 %v854_v23, %v2498_v26 }
 0x118   : > { %667 = vperm.xlu2 %1628, %v1683_v10   ;;  %v647_v55 = vadd.f32 %v646_v59, %v645_v29  ;;  %v630_v29 = vmul.f32 %v1683_v10, %v629_v3 }
 0x119   : > { %448 = vperm.xlu1 %1627, %v2403_v32   ;;  %v1689_v32 = vpop.eup %1688  ;;  %v862_v43 = vmax.f32 %v858_v60, %v2493_v8 }
 0x11a   : > { %v649_v19 = vadd.f32 %v648_v52, %v647_v55  ;;  %v2534_v61 = vpop.eup %1690  ;;  %v652_v30 = vsel %vm340_vm1, %v1689_v32, 0.0 }
 0x11b   : > { %v2516_v34 = vpop.xlane.xlu2 %1113  ;;  %v2518_v12 = vpop.xlane.xlu1 %843  ;;  %v654_v50 = vsel %vm340_vm1, %v2534_v61, 0.0 }
 0x11c   : > { %v2524_v0 = vpop.xlane.xlu0 %845  ;;  %v651_v51 = vadd.f32 %v650_v44, %v649_v19  ;;  %v2540_v39 = vpop.eup %1692 }
 0x11d   : > { %698 = vperm.xlu0 %1629, %v1675_v54   ;;  %v860_v54 = vmax.f32 %v856_v38, %v2518_v12  ;;  %v861_v14 = vmax.f32 %v857_v31, %v2524_v0  ;;  %v1695_v6 = vpop.eup %1694 }
 0x11e   : > { %v653_v49 = vadd.f32 %v652_v30, %v651_v51  ;;  %v2559_v42 = vpop.eup %1696  ;;  %v658_v40 = vsel %vm340_vm1, %v1695_v6, 0.0 }
 0x11f   : > { %v864_v25 = vmax.f32 %v860_v54, %v861_v14  ;;  %v660_v24 = vsel %vm340_vm1, %v2559_v42, 0.0 }
 0x120   : > { %688 = vperm.xlu2 %1628, %v2472_v27   ;;  %v655_v2 = vadd.f32 %v654_v50, %v653_v49 }
 0x121   : > { %678 = vperm.xlu1 %1627, %v2459_v62   ;;  %v656_v62 = vsel %vm340_vm1, %v2540_v39, 0.0 }
 0x122   : > { %v657_v27 = vadd.f32 %v656_v62, %v655_v2 }
 0x123   : > { %v2549_v36 = vpop.xlane.xlu2 %1119  ;;  %v2551_v63 = vpop.xlane.xlu1 %849 }
 0x124   : > { %v863_v5 = vmax.f32 %v859_v35, %v2551_v63  ;;  %v2557_v58 = vpop.xlane.xlu0 %1109  ;;  %v659_v9 = vadd.f32 %v658_v40, %v657_v27 }
 0x125   : > { %713 = vperm.xlu0 %1629, %v1681_v4  }
 0x126   : > { %v865_v47 = vmax.f32 %v862_v43, %v863_v5  ;;  %v661_v59 = vadd.f32 %v660_v24, %v659_v9 }
 0x128   : > { %v866_v22 = vmax.f32 %v864_v25, %v865_v47  ;;  %703 = vperm.xlu2 %1628, %v2489_v7   ;;  %v662_v52 = vadd.f32 %v661_v59, %v630_v29 }
 0x129   : > { %693 = vperm.xlu1 %1627, %v2477_v37  }
 0x12a   : > { %v2565_v55 = vmax.f32 %v851_v17, %v866_v22  ;;  %663 = vst.msk [vmem:[#allocation3] sm:$0xff] %vm340_vm1, %v662_v52 }
 0x12b   : > { %v2568_v13 = vpop.xlane.xlu2 %1125  ;;  %v2570_v19 = vpop.xlane.xlu1 %1111 }
 0x12c   : > { %v871_v4 = vsub.f32 %v2417_v57, %v2565_v55  ;;  %1074 = vst.msk [vmem:[#allocation2] sm:$0xff] %vm340_vm1, %v2565_v55  ;;  %v2576_v10 = vpop.xlane.xlu0 %1115  ;;  %v872_v37 = vsub.f32 %v2421_v15, %v2565_v55  ;;  %v873_v7 = vsub.f32 %v2392_v16, %v2565_v55  ;;  %v874_v44 = vsub.f32 %v2445_v46, %v2565_v55 }
 0x12d   : > { %v868_v20 = vsub.f32 %v851_v17, %v2565_v55  ;;  %728 = vperm.xlu0 %1629, %v1689_v32   ;;  %v875_v57 = vsub.f32 %v2448_v45, %v2565_v55  ;;  %v876_v48 = vsub.f32 %v2415_v56, %v2565_v55  ;;  %v877_v16 = vsub.f32 %v2466_v18, %v2565_v55 }
 0x12e   : > { %v887_v23 = vmul.f32 1.442695, %v871_v4  ;;  %v889_v51 = vmul.f32 1.442695, %v872_v37  ;;  %v891_v30 = vmul.f32 1.442695, %v873_v7  ;;  %v878_v60 = vsub.f32 %v2470_v28, %v2565_v55 }
 0x12f   : > { %v893_v31 = vmul.f32 1.442695, %v874_v44  ;;  %v869_v15 = vmul.f32 1.442695, %v868_v20  ;;  %v895_v46 = vmul.f32 1.442695, %v875_v57  ;;  %v880_v50 = vsub.f32 %v2495_v1, %v2565_v55 }
 0x130   : > { %1698 = vpow2.f32 %v887_v23  ;;  %718 = vperm.xlu2 %1628, %v2510_v53   ;;  %v879_v53 = vsub.f32 %v2443_v11, %v2565_v55  ;;  %v899_v18 = vmul.f32 1.442695, %v877_v16  ;;  %v901_v54 = vmul.f32 1.442695, %v878_v60 }
 0x131   : > { %708 = vperm.xlu1 %1627, %v2500_v41   ;;  %1700 = vpow2.f32 %v889_v51  ;;  %v897_v41 = vmul.f32 1.442695, %v876_v48  ;;  %v883_v9 = vsub.f32 %v2518_v12, %v2565_v55  ;;  %v884_v59 = vsub.f32 %v2524_v0, %v2565_v55 }
 0x132   : > { %1702 = vpow2.f32 %v891_v30  ;;  %v903_v1 = vmul.f32 1.442695, %v879_v53  ;;  %v885_v4 = vsub.f32 %v2493_v8, %v2565_v55  ;;  %v886_v23 = vsub.f32 %v2551_v63, %v2565_v55 }
 0x133   : > { %v2594_v32 = vpop.xlane.xlu2 %1131  ;;  %v2596_v45 = vpop.xlane.xlu1 %1117  ;;  %1704 = vpow2.f32 %v893_v31  ;;  %v911_v7 = vmul.f32 1.442695, %v883_v9  ;;  %v1143_v60 = vmax.f32 %v2570_v19, %v2549_v36 }
 0x134   : > { %v2598_v56 = vpop.xlane.xlu0 %1121  ;;  %1706 = vpow2.f32 %v869_v15  ;;  %v915_v51 = vmul.f32 1.442695, %v885_v4  ;;  %v1142_v31 = vmax.f32 %v2557_v58, %v2596_v45  ;;  %v917_v53 = vmul.f32 1.442695, %v886_v23  ;;  %v2718_v23 = vld [vmem:[#allocation2] sm:$0xff] }
 0x135   : > { %743 = vperm.xlu0 %1629, %v1695_v6   ;;  %1708 = vpow2.f32 %v895_v46  ;;  %v881_v6 = vsub.f32 %v2498_v26, %v2565_v55  ;;  %v905_v26 = vmul.f32 1.442695, %v880_v50  ;;  %v1144_v46 = vmax.f32 %v2516_v34, %v2598_v56 }
 0x136   : > { %v2604_v38 = vpop.eup %1698  ;;  %1710 = vpow2.f32 %v897_v41 }
 0x137   : > { %v2606_v49 = vpop.eup %1700  ;;  %v921_v28 = vsel %vm340_vm1, %v2604_v38, 0.0  ;;  %1712 = vpow2.f32 %v899_v18  ;;  %v907_v24 = vmul.f32 1.442695, %v881_v6 }
 0x138   : > { %v1703_v14 = vpop.eup %1702  ;;  %v922_v11 = vsel %vm340_vm1, %v2606_v49, 0.0  ;;  %733 = vperm.xlu2 %1628, %v2534_v61   ;;  %v882_v61 = vsub.f32 %v2464_v21, %v2565_v55  ;;  %1714 = vpow2.f32 %v901_v54 }
 0x139   : > { %723 = vperm.xlu1 %1627, %v2514_v33   ;;  %v2616_v35 = vpop.eup %1704  ;;  %v923_v2 = vadd.f32 %v922_v11, %v921_v28  ;;  %v924_v33 = vsel %vm340_vm1, %v1703_v14, 0.0  ;;  %1716 = vpow2.f32 %v903_v1 }
 0x13a   : > { %v2624_v5 = vpop.eup %1706  ;;  %v926_v25 = vsel %vm340_vm1, %v2616_v35, 0.0  ;;  %1718 = vpow2.f32 %v905_v26  ;;  %v909_v17 = vmul.f32 1.442695, %v882_v61 }
 0x13b   : > { %v2620_v62 = vpop.xlane.xlu2 %1137  ;;  %v2622_v43 = vpop.xlane.xlu1 %1123  ;;  %v925_v40 = vadd.f32 %v924_v33, %v923_v2  ;;  %1720 = vpow2.f32 %v907_v24 }
 0x13c   : > { %v2627_v27 = vpop.xlane.xlu0 %1127  ;;  %v2629_v3 = vpop.eup %1708  ;;  %1722 = vpow2.f32 %v909_v17  ;;  %v1145_v63 = vmax.f32 %v2576_v10, %v2622_v43 }
 0x13d   : > { %957 = vperm.xlu0 %1629, %v2624_v5   ;;  %v2636_v47 = vpop.eup %1710  ;;  %v927_v22 = vadd.f32 %v926_v25, %v925_v40  ;;  %v928_v29 = vsel %vm340_vm1, %v2629_v3, 0.0  ;;  %1724 = vpow2.f32 %v911_v7  ;;  %v1147_v28 = vmax.f32 %v1143_v60, %v2627_v27 }
 0x13e   : > { %v2642_v21 = vpop.eup %1712  ;;  %v930_v12 = vsel %vm340_vm1, %v2636_v47, 0.0  ;;  %v1149_v33 = vmax.f32 %v1145_v63, %v2594_v32 }
 0x13f   : > { %v929_v52 = vadd.f32 %v928_v29, %v927_v22  ;;  %v2652_v37 = vpop.eup %1714 }
 0x140   : > { %748 = vperm.xlu2 %1628, %v2559_v42   ;;  %v2662_v8 = vpop.eup %1716  ;;  %v913_v42 = vmul.f32 1.442695, %v884_v59  ;;  %v934_v30 = vsel %vm340_vm1, %v2652_v37, 0.0 }
 0x141   : > { %738 = vperm.xlu1 %1627, %v2540_v39   ;;  %v931_v44 = vadd.f32 %v930_v12, %v929_v52  ;;  %v932_v39 = vsel %vm340_vm1, %v2642_v21, 0.0  ;;  %v2670_v15 = vpop.eup %1718  ;;  %v936_v55 = vsel %vm340_vm1, %v2662_v8, 0.0 }
 0x142   : > { %v2680_v41 = vpop.eup %1720  ;;  %1726 = vpow2.f32 %v913_v42  ;;  %v938_v54 = vsel %vm340_vm1, %v2670_v15, 0.0 }
 0x143   : > { %v2654_v20 = vpop.xlane.xlu1 %1129  ;;  %v2656_v0 = vpop.permute.xlu2 %383  ;;  %v933_v48 = vadd.f32 %v932_v39, %v931_v44  ;;  %1728 = vpow2.f32 %v915_v51 }
 0x144   : > { %v2660_v57 = vpop.xlane.xlu0 %1133  ;;  %v1148_v50 = vmax.f32 %v1144_v46, %v2654_v20  ;;  %v2689_v11 = vpop.eup %1722  ;;  %1730 = vpow2.f32 %v917_v53 }
 0x145   : > { %973 = vperm.xlu0 %1629, %v1703_v14   ;;  %v935_v16 = vadd.f32 %v934_v30, %v933_v48  ;;  %v1146_v14 = vmax.f32 %v1142_v31, %v2568_v13  ;;  %v942_v22 = vsel %vm340_vm1, %v2689_v11, 0.0 }
 0x146   : > { %v1152_v9 = vmax.f32 %v1148_v50, %v2620_v62 }
 0x147   : > { %v937_v18 = vadd.f32 %v936_v55, %v935_v16  ;;  %v1150_v61 = vmax.f32 %v1146_v14, %v2660_v57 }
 0x148   : > { %963 = vperm.xlu2 %1628, %v2604_v38   ;;  %v2702_v38 = vpop.eup %1724 }
 0x149   : > { %968 = vperm.xlu1 %1627, %v2606_v49   ;;  %v939_v6 = vadd.f32 %v938_v54, %v937_v18  ;;  %v940_v49 = vsel %vm340_vm1, %v2680_v41, 0.0  ;;  %v2709_v59 = vpop.eup %1726  ;;  %v944_v4 = vsel %vm340_vm1, %v2702_v38, 0.0 }
 0x14a   : > { %v2713_v12 = vpop.eup %1728  ;;  %v946_v39 = vsel %vm340_vm1, %v2709_v59, 0.0 }
 0x14b   : > { %v2691_v1 = vpop.xlane.xlu1 %1135  ;;  %v2693_v2 = vpop.permute.xlu2 %393  ;;  %v941_v25 = vadd.f32 %v940_v49, %v939_v6  ;;  %v948_v30 = vsel %vm340_vm1, %v2713_v12, 0.0  ;;  %v1767_v6 = vld [vmem:[%s2098_s29 + $0x8] sm:$0xff] }
 0x14c   : > { %v1151_v26 = vmax.f32 %v1147_v28, %v2691_v1  ;;  %v2700_v40 = vpop.xlane.xlu0 %1139  ;;  %v1766_v28 = vld [vmem:[%s2098_s29] sm:$0xff] }
 0x14d   : > { %v1153_v24 = vmax.f32 %v1149_v33, %v2700_v40  ;;  %983 = vperm.xlu0 %1629, %v2629_v3   ;;  %v943_v17 = vadd.f32 %v942_v22, %v941_v25  ;;  %v2721_v3 = vpop.eup %1730  ;;  %v461_v14 = vmul.f32 %v1766_v28, %v2656_v0 }
 0x14e   : > { %v1154_v29 = vmax.f32 %v1150_v61, %v1151_v26  ;;  %v950_v16 = vsel %vm340_vm1, %v2721_v3, 0.0 }
 0x14f   : > { %v1155_v52 = vmax.f32 %v1152_v9, %v1153_v24  ;;  %v945_v7 = vadd.f32 %v944_v4, %v943_v17 }
 0x150   : > { %978 = vperm.xlu2 %1628, %v2616_v35  }
 0x151   : > { %v1156_v44 = vmax.f32 %v1154_v29, %v1155_v52  ;;  %988 = vperm.xlu1 %1627, %v2636_v47   ;;  %v947_v42 = vadd.f32 %v946_v39, %v945_v7  ;;  %v919_v47 = vld [vmem:[#allocation3] sm:$0xff] }
 0x152   : > { %v920_v63 = vmul.f32 %v2624_v5, %v919_v47 }
 0x153   : > { %v2724_v48 = vmax.f32 %v2718_v23, %v1156_v44  ;;  %v2726_v51 = vpop.permute.xlu2 %403  ;;  %v949_v31 = vadd.f32 %v948_v30, %v947_v42 }
 0x155   : > { %1364 = vst.msk [vmem:[#allocation2] sm:$0xff] %vm340_vm1, %v2724_v48  ;;  %v1161_v35 = vsub.f32 %v2557_v58, %v2724_v48  ;;  %v1162_v46 = vsub.f32 %v2570_v19, %v2724_v48  ;;  %998 = vperm.xlu0 %1629, %v2652_v37   ;;  %v951_v55 = vadd.f32 %v950_v16, %v949_v31 }
 0x156   : > { %v1163_v60 = vsub.f32 %v2516_v34, %v2724_v48  ;;  %v1164_v53 = vsub.f32 %v2576_v10, %v2724_v48  ;;  %v1165_v50 = vsub.f32 %v2596_v45, %v2724_v48  ;;  %v1166_v19 = vsub.f32 %v2549_v36, %v2724_v48 }
 0x157   : > { %v952_v18 = vadd.f32 %v951_v55, %v920_v63  ;;  %v1177_v58 = vmul.f32 1.442695, %v1161_v35  ;;  %v1179_v54 = vmul.f32 1.442695, %v1162_v46  ;;  %v1167_v45 = vsub.f32 %v2598_v56, %v2724_v48 }
 0x158   : > { %993 = vperm.xlu2 %1628, %v2642_v21   ;;  %v1181_v34 = vmul.f32 1.442695, %v1163_v60  ;;  %v1183_v5 = vmul.f32 1.442695, %v1164_v53  ;;  %v1185_v37 = vmul.f32 1.442695, %v1165_v50  ;;  %v1168_v21 = vsub.f32 %v2622_v43, %v2724_v48 }
 0x159   : > { %1003 = vperm.xlu1 %1627, %v2662_v8   ;;  %953 = vst.msk [vmem:[#allocation3] sm:$0xff] %vm340_vm1, %v952_v18  ;;  %1732 = vpow2.f32 %v1177_v58  ;;  %v1187_v36 = vmul.f32 1.442695, %v1166_v19  ;;  %v1169_v56 = vsub.f32 %v2568_v13, %v2724_v48  ;;  %v1189_v49 = vmul.f32 1.442695, %v1167_v45  ;;  %v1769_v18 = vld [vmem:[%s2098_s29 + $0x18] sm:$0xff] }
 0x15a   : > { %1734 = vpow2.f32 %v1179_v54  ;;  %v1158_v26 = vsub.f32 %v2718_v23, %v2724_v48  ;;  %v1170_v9 = vsub.f32 %v2627_v27, %v2724_v48  ;;  %v1191_v13 = vmul.f32 1.442695, %v1168_v21 }
 0x15b   : > { %v2751_v10 = vpop.permute.xlu2 %413  ;;  %1736 = vpow2.f32 %v1181_v34  ;;  %v1171_v29 = vsub.f32 %v2654_v20, %v2724_v48  ;;  %v1193_v27 = vmul.f32 1.442695, %v1169_v56  ;;  %v1172_v23 = vsub.f32 %v2594_v32, %v2724_v48  ;;  %v1770_v34 = vld [vmem:[%s2098_s29 + $0x20] sm:$0xff] }
 0x15c   : > { %1738 = vpow2.f32 %v1183_v5  ;;  %v1159_v7 = vmul.f32 1.442695, %v1158_v26  ;;  %v1195_v20 = vmul.f32 1.442695, %v1170_v9  ;;  %v1173_v16 = vsub.f32 %v2660_v57, %v2724_v48 }
 0x15d   : > { %1013 = vperm.xlu0 %1629, %v2680_v41   ;;  %1740 = vpow2.f32 %v1185_v37  ;;  %v1768_v41 = vld [vmem:[%s2098_s29 + $0x10] sm:$0xff]  ;;  %v1174_v63 = vsub.f32 %v2691_v1, %v2724_v48  ;;  %v1199_v57 = vmul.f32 1.442695, %v1172_v23  ;;  %v465_v5 = vmul.f32 %v1770_v34, %v2726_v51 }
 0x15e   : > { %v463_v43 = vmul.f32 %v1768_v41, %v2693_v2  ;;  %1742 = vpow2.f32 %v1187_v36  ;;  %v1201_v54 = vmul.f32 1.442695, %v1173_v16  ;;  %v1176_v21 = vsub.f32 %v2700_v40, %v2724_v48 }
 0x15f   : > { %v389_v8 = vpop.permute.xlu0 %388  ;;  %v2764_v61 = vpop.eup %1732  ;;  %1744 = vpow2.f32 %v1189_v49  ;;  %v1203_v36 = vmul.f32 1.442695, %v1174_v63 }
 0x160   : > { %v462_v33 = vmul.f32 %v1767_v6, %v389_v8  ;;  %1008 = vperm.xlu2 %1628, %v2670_v15   ;;  %v1735_v0 = vpop.eup %1734  ;;  %1746 = vpow2.f32 %v1191_v13  ;;  %v1207_v49 = vmul.f32 1.442695, %v1176_v21 }
 0x161   : > { %1018 = vperm.xlu1 %1627, %v2689_v11   ;;  %v1211_v11 = vsel %vm340_vm1, %v2764_v61, 0.0  ;;  %v2779_v2 = vpop.eup %1736  ;;  %v1212_v15 = vsel %vm340_vm1, %v1735_v0, 0.0  ;;  %1748 = vpow2.f32 %v1193_v27 }
 0x162   : > { %v477_v25 = vadd.f32 %v462_v33, %v461_v14  ;;  %v2784_v17 = vpop.eup %1738  ;;  %v1213_v52 = vadd.f32 %v1212_v15, %v1211_v11  ;;  %v1214_v44 = vsel %vm340_vm1, %v2779_v2, 0.0  ;;  %1750 = vpow2.f32 %v1159_v7 }
 0x163   : > { %v2775_v24 = vpop.permute.xlu2 %428  ;;  %v2777_v22 = vpop.permute.xlu1 %377  ;;  %v1216_v31 = vsel %vm340_vm1, %v2784_v17, 0.0  ;;  %1752 = vpow2.f32 %v1195_v20 }
 0x164   : > { %v478_v4 = vadd.f32 %v477_v25, %v463_v43  ;;  %v2789_v39 = vpop.eup %1740  ;;  %v1215_v42 = vadd.f32 %v1214_v44, %v1213_v52 }
 0x165   : > { %1028 = vperm.xlu0 %1629, %v2709_v59   ;;  %v2797_v47 = vpop.eup %1742  ;;  %v1197_v59 = vmul.f32 1.442695, %v1171_v29  ;;  %v1218_v32 = vsel %vm340_vm1, %v2789_v39, 0.0  ;;  %v1772_v29 = vld [vmem:[%s2098_s29 + $0x30] sm:$0xff] }
 0x166   : > { %v1217_v35 = vadd.f32 %v1216_v31, %v1215_v42  ;;  %v2805_v46 = vpop.eup %1744  ;;  %v467_v15 = vmul.f32 %v1772_v29, %v2751_v10 }
 0x167   : > { %v2793_v30 = vpop.permute.xlu0 %423  ;;  %v2814_v58 = vpop.eup %1746  ;;  %1754 = vpow2.f32 %v1197_v59  ;;  %v1222_v1 = vsel %vm340_vm1, %v2805_v46, 0.0 }
 0x168   : > { %1023 = vperm.xlu2 %1628, %v2702_v38   ;;  %v1219_v55 = vadd.f32 %v1218_v32, %v1217_v35  ;;  %v1175_v38 = vsub.f32 %v2620_v62, %v2724_v48  ;;  %v2822_v37 = vpop.eup %1748  ;;  %1756 = vpow2.f32 %v1199_v57  ;;  %v1224_v28 = vsel %vm340_vm1, %v2814_v58, 0.0  ;;  %v1773_v32 = vld [vmem:[%s2098_s29 + $0x38] sm:$0xff] }
 0x169   : > { %1033 = vperm.xlu1 %1627, %v2713_v12   ;;  %v1220_v12 = vsel %vm340_vm1, %v2797_v47, 0.0  ;;  %v1751_v62 = vpop.eup %1750  ;;  %1758 = vpow2.f32 %v1201_v54  ;;  %v1226_v40 = vsel %vm340_vm1, %v2822_v37, 0.0  ;;  %v1775_v54 = vld [vmem:[%s2098_s29 + $0x48] sm:$0xff] }
 0x16a   : > { %v1221_v19 = vadd.f32 %v1220_v12, %v1219_v55  ;;  %v2830_v33 = vpop.eup %1752  ;;  %v1205_v51 = vmul.f32 1.442695, %v1175_v38  ;;  %1760 = vpow2.f32 %v1203_v36  ;;  %v1209_v55 = vld [vmem:[#allocation3] sm:$0xff] }
 0x16b   : > { %v2809_v60 = vpop.permute.xlu2 %443  ;;  %v399_v53 = vpop.permute.xlu1 %398  ;;  %v1228_v25 = vsel %vm340_vm1, %v2830_v33, 0.0 }
 0x16c   : > { %v464_v50 = vmul.f32 %v1769_v18, %v399_v53  ;;  %v1223_v8 = vadd.f32 %v1222_v1, %v1221_v19  ;;  %1762 = vpow2.f32 %v1205_v51  ;;  %v470_v19 = vmul.f32 %v1775_v54, %v2775_v24  ;;  %v1777_v24 = vld [vmem:[%s2098_s29 + $0x58] sm:$0xff] }
 0x16d   : > { %1258 = vperm.xlu0 %1629, %v1735_v0   ;;  %v2835_v48 = vpop.eup %1754  ;;  %v1771_v0 = vld [vmem:[%s2098_s29 + $0x28] sm:$0xff]  ;;  %1764 = vpow2.f32 %v1207_v49  ;;  %v1789_v54 = vld [vmem:[%s2098_s29 + $0xb8] sm:$0xff] }
 0x16e   : > { %v479_v45 = vadd.f32 %v478_v4, %v464_v50  ;;  %v1225_v56 = vadd.f32 %v1224_v28, %v1223_v8  ;;  %v2842_v13 = vpop.eup %1756  ;;  %v1776_v8 = vld [vmem:[%s2098_s29 + $0x50] sm:$0xff] }
 0x16f   : > { %v2828_v14 = vpop.permute.xlu0 %438  ;;  %v2849_v52 = vpop.eup %1758  ;;  %v1232_v7 = vsel %vm340_vm1, %v2842_v13, 0.0 }
 0x170   : > { %v480_v6 = vadd.f32 %v479_v45, %v465_v5  ;;  %1038 = vperm.xlu2 %1628, %v2721_v3   ;;  %v1227_v41 = vadd.f32 %v1226_v40, %v1225_v56  ;;  %v1230_v3 = vsel %vm340_vm1, %v2835_v48, 0.0  ;;  %v2853_v20 = vpop.eup %1760  ;;  %v1234_v10 = vsel %vm340_vm1, %v2849_v52, 0.0 }
 0x171   : > { %1247 = vperm.xlu1 %1627, %v1751_v62   ;;  %v1236_v35 = vsel %vm340_vm1, %v2853_v20, 0.0  ;;  %v1210_v5 = vmul.f32 %v1751_v62, %v1209_v55  ;;  %v1778_v62 = vld [vmem:[%s2098_s29 + $0x60] sm:$0xff] }
 0x172   : > { %v1229_v11 = vadd.f32 %v1228_v25, %v1227_v41 }
 0x173   : > { %v2837_v43 = vpop.permute.xlu2 %458  ;;  %v409_v26 = vpop.permute.xlu1 %408 }
 0x174   : > { %v466_v9 = vmul.f32 %v1771_v0, %v409_v26  ;;  %v1231_v4 = vadd.f32 %v1230_v3, %v1229_v11  ;;  %v1779_v26 = vld [vmem:[%s2098_s29 + $0x68] sm:$0xff] }
 0x175   : > { %1263 = vperm.xlu0 %1629, %v2779_v2   ;;  %v2859_v2 = vpop.eup %1762 }
 0x176   : > { %v481_v27 = vadd.f32 %v480_v6, %v466_v9  ;;  %v1233_v42 = vadd.f32 %v1232_v7, %v1231_v4  ;;  %v2866_v57 = vpop.eup %1764  ;;  %v1238_v53 = vsel %vm340_vm1, %v2859_v2, 0.0  ;;  %v472_v6 = vmul.f32 %v1777_v24, %v2828_v14  ;;  %v1780_v14 = vld [vmem:[%s2098_s29 + $0x70] sm:$0xff]  ;;  %v1782_v4 = vld [vmem:[%s2098_s29 + $0x80] sm:$0xff] }
 0x177   : > { %v454_v44 = vpop.permute.xlu0 %453  ;;  %v1240_v38 = vsel %vm340_vm1, %v2866_v57, 0.0  ;;  %v1792_v24 = vld [vmem:[%s2098_s29 + $0xd0] sm:$0xff] }
 0x178   : > { %v482_v23 = vadd.f32 %v481_v27, %v467_v15  ;;  %1253 = vperm.xlu2 %1628, %v2764_v61   ;;  %v1235_v31 = vadd.f32 %v1234_v10, %v1233_v42  ;;  %v1774_v61 = vld [vmem:[%s2098_s29 + $0x40] sm:$0xff]  ;;  %v475_v0 = vmul.f32 %v1780_v14, %v454_v44  ;;  %v1783_v44 = vld [vmem:[%s2098_s29 + $0x88] sm:$0xff]  ;;  %v1784_v42 = vld [vmem:[%s2098_s29 + $0x90] sm:$0xff] }
 0x179   : > { %1268 = vperm.xlu1 %1627, %v2784_v17   ;;  %v469_v12 = vmul.f32 %v1774_v61, %v2793_v30  ;;  %v1795_v14 = vld [vmem:[%s2098_s29 + $0xe8] sm:$0xff] }
 0x17a   : > { %v1237_v17 = vadd.f32 %v1236_v35, %v1235_v31 }
 0x17b   : > { %v419_v16 = vpop.permute.xlu1 %418  ;;  %v2861_v59 = vpop.permute.xlu2 %667 }
 0x17c   : > { %v468_v63 = vmul.f32 %v1773_v32, %v419_v16  ;;  %v1239_v50 = vadd.f32 %v1238_v53, %v1237_v17  ;;  %v1786_v17 = vld [vmem:[%s2098_s29 + $0xa0] sm:$0xff] }
 0x17d   : > { %1278 = vperm.xlu0 %1629, %v2797_v47  }
 0x17e   : > { %v483_v18 = vadd.f32 %v482_v23, %v468_v63  ;;  %v1241_v45 = vadd.f32 %v1240_v38, %v1239_v50 }
 0x17f   : > { %v674_v34 = vpop.permute.xlu0 %673 }
 0x180   : > { %v484_v1 = vadd.f32 %v483_v18, %v469_v12  ;;  %1273 = vperm.xlu2 %1628, %v2789_v39   ;;  %v1242_v21 = vadd.f32 %v1241_v45, %v1210_v5  ;;  %v473_v39 = vmul.f32 %v1778_v62, %v2809_v60  ;;  %v1781_v60 = vld [vmem:[%s2098_s29 + $0x78] sm:$0xff]  ;;  %v751_v7 = vmul.f32 %v1782_v4, %v674_v34  ;;  %v1791_v45 = vld [vmem:[%s2098_s29 + $0xc8] sm:$0xff] }
 0x181   : > { %1283 = vperm.xlu1 %1627, %v2805_v46   ;;  %v476_v11 = vmul.f32 %v1781_v60, %v2837_v43 }
 0x182   : > { %v485_v30 = vadd.f32 %v484_v1, %v470_v19  ;;  %1243 = vst.msk [vmem:[#allocation3] sm:$0xff] %vm340_vm1, %v1242_v21  ;;  %v1790_v1 = vld [vmem:[%s2098_s29 + $0xc0] sm:$0xff] }
 0x183   : > { %v434_v47 = vpop.permute.xlu1 %433  ;;  %v689_v36 = vpop.permute.xlu2 %688 }
 0x184   : > { %v471_v28 = vmul.f32 %v1776_v8, %v434_v47 }
 0x185   : > { %1293 = vperm.xlu0 %1629, %v2822_v37   ;;  %v374_v37 = vld [vmem:[#allocation4] sm:$0xff] }
 0x186   : > { %v486_v51 = vadd.f32 %v485_v30, %v471_v28 }
 0x187   : > { %v684_v56 = vpop.permute.xlu0 %683 }
 0x188   : > { %v487_v46 = vadd.f32 %v486_v51, %v472_v6  ;;  %1288 = vperm.xlu2 %1628, %v2814_v58   ;;  %v380_v58 = vmul.f32 %v2777_v22, %v374_v37  ;;  %v753_v43 = vmul.f32 %v1784_v42, %v684_v56  ;;  %v1793_v51 = vld [vmem:[%s2098_s29 + $0xd8] sm:$0xff] }
 0x189   : > { %1298 = vperm.xlu1 %1627, %v2830_v33  }
 0x18a   : > { %v488_v40 = vadd.f32 %v487_v46, %v473_v39  ;;  %v1794_v46 = vld [vmem:[%s2098_s29 + $0xe0] sm:$0xff] }
 0x18b   : > { %v449_v49 = vpop.permute.xlu1 %448  ;;  %v704_v41 = vpop.permute.xlu2 %703 }
 0x18c   : > { %v474_v25 = vmul.f32 %v1779_v26, %v449_v49 }
 0x18d   : > { %1308 = vperm.xlu0 %1629, %v2842_v13  }
 0x18e   : > { %v489_v9 = vadd.f32 %v488_v40, %v474_v25 }
 0x18f   : > { %v699_v3 = vpop.permute.xlu0 %698 }
 0x190   : > { %v490_v33 = vadd.f32 %v489_v9, %v475_v0  ;;  %1303 = vperm.xlu2 %1628, %v2835_v48   ;;  %v1796_v9 = vld [vmem:[%s2098_s29 + $0xf0] sm:$0xff] }
 0x191   : > { %1313 = vperm.xlu1 %1627, %v2849_v52   ;;  %v1785_v52 = vld [vmem:[%s2098_s29 + $0x98] sm:$0xff] }
 0x192   : > { %v491_v29 = vadd.f32 %v490_v33, %v476_v11  ;;  %v754_v31 = vmul.f32 %v1785_v52, %v689_v36  ;;  %v1797_v11 = vld [vmem:[%s2098_s29 + $0xf8] sm:$0xff]  ;;  %v1798_v52 = vld [vmem:[%s2098_s29 + $0x108] sm:$0xff] }
 0x193   : > { %v679_v15 = vpop.permute.xlu1 %678  ;;  %v719_v27 = vpop.permute.xlu2 %718 }
 0x194   : > { %v492_v13 = vadd.f32 %v491_v29, %v380_v58  ;;  %v752_v23 = vmul.f32 %v1783_v44, %v679_v15  ;;  %v760_v30 = vmul.f32 %v1791_v45, %v719_v27 }
 0x195   : > { %1323 = vperm.xlu0 %1629, %v2859_v2   ;;  %v1787_v2 = vld [vmem:[%s2098_s29 + $0xa8] sm:$0xff] }
 0x196   : > { %v767_v10 = vadd.f32 %v752_v23, %v751_v7  ;;  %v670_v22 = vmul.f32 %v2861_v59, %v492_v13  ;;  %v756_v53 = vmul.f32 %v1787_v2, %v699_v3  ;;  %v1788_v59 = vld [vmem:[%s2098_s29 + $0xb0] sm:$0xff] }
 0x197   : > { %v714_v16 = vpop.permute.xlu0 %713  ;;  %v757_v12 = vmul.f32 %v1788_v59, %v704_v41 }
 0x198   : > { %v768_v48 = vadd.f32 %v767_v10, %v753_v43  ;;  %1318 = vperm.xlu2 %1628, %v2853_v20   ;;  %v759_v34 = vmul.f32 %v1790_v1, %v714_v16  ;;  %v1799_v16 = vld [vmem:[%s2098_s29 + $0x100] sm:$0xff] }
 0x199   : > { %1328 = vperm.xlu1 %1627, %v2866_v57  }
 0x19a   : > { %v769_v35 = vadd.f32 %v768_v48, %v754_v31 }
 0x19b   : > { %v694_v32 = vpop.permute.xlu1 %693  ;;  %v734_v63 = vpop.permute.xlu2 %733 }
 0x19c   : > { %v755_v55 = vmul.f32 %v1786_v17, %v694_v32  ;;  %v763_v56 = vmul.f32 %v1794_v46, %v734_v63  ;;  %v1800_v17 = vld [vmem:[%s2098_s29 + $0x110] sm:$0xff] }
 0x19e   : > { %v770_v61 = vadd.f32 %v769_v35, %v755_v55 }
 0x19f   : > { %v729_v50 = vpop.permute.xlu0 %728 }
 0x1a0   : > { %v771_v18 = vadd.f32 %v770_v61, %v756_v53  ;;  %v762_v62 = vmul.f32 %v1793_v51, %v729_v50  ;;  %v1801_v61 = vld [vmem:[%s2098_s29 + $0x118] sm:$0xff] }
 0x1a2   : > { %v772_v38 = vadd.f32 %v771_v18, %v757_v12 }
 0x1a3   : > { %v709_v57 = vpop.permute.xlu1 %708  ;;  %v749_v20 = vpop.permute.xlu2 %748 }
 0x1a4   : > { %v758_v19 = vmul.f32 %v1789_v54, %v709_v57  ;;  %v766_v33 = vmul.f32 %v1797_v11, %v749_v20  ;;  %v1803_v54 = vld [vmem:[%s2098_s29 + $0x128] sm:$0xff] }
 0x1a6   : > { %v773_v5 = vadd.f32 %v772_v38, %v758_v19  ;;  %v1802_v38 = vld [vmem:[%s2098_s29 + $0x120] sm:$0xff] }
 0x1a7   : > { %v744_v47 = vpop.permute.xlu0 %743 }
 0x1a8   : > { %v774_v21 = vadd.f32 %v773_v5, %v759_v34  ;;  %v765_v37 = vmul.f32 %v1796_v9, %v744_v47  ;;  %v1805_v47 = vld [vmem:[%s2098_s29 + $0x188] sm:$0xff] }
 0x1aa   : > { %v775_v36 = vadd.f32 %v774_v21, %v760_v30  ;;  %v1804_v30 = vld [vmem:[%s2098_s29 + $0x130] sm:$0xff] }
 0x1ab   : > { %v724_v8 = vpop.permute.xlu1 %723  ;;  %v964_v28 = vpop.permute.xlu2 %963 }
 0x1ac   : > { %v761_v6 = vmul.f32 %v1792_v24, %v724_v8  ;;  %v1041_v35 = vmul.f32 %v1799_v16, %v964_v28  ;;  %v1806_v28 = vld [vmem:[%s2098_s29 + $0x138] sm:$0xff] }
 0x1ae   : > { %v776_v39 = vadd.f32 %v775_v36, %v761_v6  ;;  %v1807_v6 = vld [vmem:[%s2098_s29 + $0x180] sm:$0xff] }
 0x1af   : > { %v958_v49 = vpop.permute.xlu0 %957 }
 0x1b0   : > { %v777_v40 = vadd.f32 %v776_v39, %v762_v62  ;;  %v1808_v39 = vld [vmem:[%s2098_s29 + $0x190] sm:$0xff] }
 0x1b2   : > { %v778_v41 = vadd.f32 %v777_v40, %v763_v56  ;;  %v1809_v56 = vld [vmem:[%s2098_s29 + $0x140] sm:$0xff] }
 0x1b3   : > { %v739_v26 = vpop.permute.xlu1 %738  ;;  %v979_v25 = vpop.permute.xlu2 %978 }
 0x1b4   : > { %v764_v0 = vmul.f32 %v1795_v14, %v739_v26  ;;  %v1044_v59 = vmul.f32 %v1801_v61, %v979_v25  ;;  %v1810_v14 = vld [vmem:[%s2098_s29 + $0x198] sm:$0xff] }
 0x1b6   : > { %v779_v60 = vadd.f32 %v778_v41, %v764_v0 }
 0x1b7   : > { %v974_v58 = vpop.permute.xlu0 %973 }
 0x1b8   : > { %v780_v3 = vadd.f32 %v779_v60, %v765_v37  ;;  %v1043_v55 = vmul.f32 %v1800_v17, %v974_v58  ;;  %v1811_v37 = vld [vmem:[%s2098_s29 + $0x1a0] sm:$0xff] }
 0x1ba   : > { %v781_v29 = vadd.f32 %v780_v3, %v766_v33  ;;  %v1812_v3 = vld [vmem:[%s2098_s29 + $0x148] sm:$0xff] }
 0x1bb   : > { %v969_v15 = vpop.permute.xlu1 %968  ;;  %v994_v27 = vpop.permute.xlu2 %993 }
 0x1bc   : > { %v782_v4 = vadd.f32 %v781_v29, %v670_v22  ;;  %v1042_v31 = vmul.f32 %v1798_v52, %v969_v15  ;;  %v1047_v21 = vmul.f32 %v1804_v30, %v994_v27  ;;  %v1813_v27 = vld [vmem:[%s2098_s29 + $0x1a8] sm:$0xff]  ;;  %v1815_v52 = vld [vmem:[%s2098_s29 + $0x158] sm:$0xff] }
 0x1be   : > { %v2916_v7 = vmul.f32 %v958_v49, %v782_v4  ;;  %v1057_v63 = vadd.f32 %v1042_v31, %v1041_v35  ;;  %v1816_v35 = vld [vmem:[%s2098_s29 + $0x1b0] sm:$0xff] }
 0x1bf   : > { %v984_v13 = vpop.permute.xlu0 %983 }
 0x1c0   : > { %v1058_v2 = vadd.f32 %v1057_v63, %v1043_v55  ;;  %v1045_v57 = vmul.f32 %v1802_v38, %v984_v13  ;;  %v1817_v55 = vld [vmem:[%s2098_s29 + $0x1b8] sm:$0xff] }
 0x1c2   : > { %v1059_v50 = vadd.f32 %v1058_v2, %v1044_v59 }
 0x1c3   : > { %v989_v44 = vpop.permute.xlu1 %988  ;;  %v1009_v23 = vpop.permute.xlu2 %1008 }
 0x1c4   : > { %v1060_v20 = vadd.f32 %v1059_v50, %v1045_v57  ;;  %v1046_v19 = vmul.f32 %v1803_v54, %v989_v44  ;;  %v1050_v58 = vmul.f32 %v1812_v3, %v1009_v23  ;;  %v1814_v44 = vld [vmem:[%s2098_s29 + $0x150] sm:$0xff]  ;;  %v1819_v57 = vld [vmem:[%s2098_s29 + $0x160] sm:$0xff] }
 0x1c6   : > { %v1061_v5 = vadd.f32 %v1060_v20, %v1046_v19  ;;  %v1820_v19 = vld [vmem:[%s2098_s29 + $0x168] sm:$0xff] }
 0x1c7   : > { %v999_v42 = vpop.permute.xlu0 %998 }
 0x1c8   : > { %v1062_v8 = vadd.f32 %v1061_v5, %v1047_v21  ;;  %v1048_v24 = vmul.f32 %v1806_v28, %v999_v42  ;;  %v1822_v21 = vld [vmem:[%s2098_s29 + $0x170] sm:$0xff] }
 0x1ca   : > { %v1063_v26 = vadd.f32 %v1062_v8, %v1048_v24 }
 0x1cb   : > { %v1004_v43 = vpop.permute.xlu1 %1003  ;;  %v2918_v10 = vpop.permute.xlu2 %1023 }
 0x1cc   : > { %v1049_v40 = vmul.f32 %v1809_v56, %v1004_v43  ;;  %v1825_v56 = vld [vmem:[%s2098_s29 + $0x178] sm:$0xff] }
 0x1ce   : > { %v1064_v9 = vadd.f32 %v1063_v26, %v1049_v40 }
 0x1cf   : > { %v1014_v48 = vpop.permute.xlu0 %1013 }
 0x1d0   : > { %v1065_v13 = vadd.f32 %v1064_v9, %v1050_v58  ;;  %v1051_v42 = vmul.f32 %v1814_v44, %v1014_v48  ;;  %v1818_v48 = vld [vmem:[%s2098_s29 + $0x1c0] sm:$0xff] }
 0x1d2   : > { %v1066_v17 = vadd.f32 %v1065_v13, %v1051_v42 }
 0x1d3   : > { %v1019_v32 = vpop.permute.xlu1 %1018  ;;  %v2922_v22 = vpop.permute.xlu2 %1038 }
 0x1d4   : > { %v1052_v31 = vmul.f32 %v1815_v52, %v1019_v32  ;;  %v1053_v32 = vmul.f32 %v1819_v57, %v2918_v10  ;;  %v1056_v40 = vmul.f32 %v1825_v56, %v2922_v22 }
 0x1d6   : > { %v1067_v61 = vadd.f32 %v1066_v17, %v1052_v31 }
 0x1d7   : > { %v2925_v53 = vpop.permute.xlu0 %1028 }
 0x1d8   : > { %v1068_v54 = vadd.f32 %v1067_v61, %v1053_v32 }
 0x1db   : > { %v2928_v12 = vpop.permute.xlu1 %1033  ;;  %v1254_v18 = vpop.permute.xlu2 %1253 }
 0x1dc   : > { %v1331_v51 = vmul.f32 %v1807_v6, %v1254_v18 }
 0x1df   : > { %v1259_v1 = vpop.permute.xlu0 %1258 }
 0x1e0   : > { %v1332_v36 = vmul.f32 %v1805_v47, %v1259_v1  ;;  %v1054_v1 = vmul.f32 %v1820_v19, %v2925_v53  ;;  %v1055_v47 = vmul.f32 %v1822_v21, %v2928_v12 }
 0x1e2   : > { %v1347_v49 = vadd.f32 %v1332_v36, %v1331_v51  ;;  %v1823_v36 = vld [vmem:[%s2098_s29 + $0x1d0] sm:$0xff]  ;;  %v1069_v24 = vadd.f32 %v1068_v54, %v1054_v1  ;;  %v1824_v51 = vld [vmem:[%s2098_s29 + $0x1d8] sm:$0xff] }
 0x1e3   : > { %v2932_v34 = vpop.permute.xlu1 %1247  ;;  %v1274_v45 = vpop.permute.xlu2 %1273 }
 0x1e4   : > { %v1335_v60 = vmul.f32 %v1811_v37, %v1274_v45  ;;  %v1821_v45 = vld [vmem:[%s2098_s29 + $0x1c8] sm:$0xff] }
 0x1e7   : > { %v1264_v62 = vpop.permute.xlu0 %1263 }
 0x1e8   : > { %v1333_v46 = vmul.f32 %v1808_v39, %v1264_v62  ;;  %v1070_v39 = vadd.f32 %v1069_v24, %v1055_v47 }
 0x1ea   : > { %v1348_v25 = vadd.f32 %v1347_v49, %v1333_v46  ;;  %v1071_v26 = vadd.f32 %v1070_v39, %v1056_v40 }
 0x1eb   : > { %v1269_v41 = vpop.permute.xlu1 %1268  ;;  %v1289_v33 = vpop.permute.xlu2 %1288 }
 0x1ec   : > { %v1334_v0 = vmul.f32 %v1810_v14, %v1269_v41  ;;  %v1338_v23 = vmul.f32 %v1817_v55, %v1289_v33  ;;  %v1826_v41 = vld [vmem:[%s2098_s29 + $0x1e0] sm:$0xff]  ;;  %v1072_v33 = vadd.f32 %v1071_v26, %v2916_v7 }
 0x1ee   : > { %v1349_v11 = vadd.f32 %v1348_v25, %v1334_v0  ;;  %v1827_v25 = vld [vmem:[%s2098_s29 + $0x1e8] sm:$0xff] }
 0x1ef   : > { %v1279_v15 = vpop.permute.xlu0 %1278 }
 0x1f0   : > { %v1350_v29 = vadd.f32 %v1349_v11, %v1335_v60  ;;  %v1336_v4 = vmul.f32 %v1813_v27, %v1279_v15  ;;  %v1828_v60 = vld [vmem:[%s2098_s29 + $0x1f0] sm:$0xff]  ;;  %v1250_v27 = vmul.f32 %v2932_v34, %v1072_v33 }
 0x1f2   : > { %v1351_v16 = vadd.f32 %v1350_v29, %v1336_v4  ;;  %v1829_v29 = vld [vmem:[%s2098_s29 + $0x1f8] sm:$0xff] }
 0x1f3   : > { %v1284_v43 = vpop.permute.xlu1 %1283  ;;  %v1304_v50 = vpop.permute.xlu2 %1303 }
 0x1f4   : > { %v1337_v63 = vmul.f32 %v1816_v35, %v1284_v43  ;;  %v1341_v8 = vmul.f32 %v1823_v36, %v1304_v50 }
 0x1f6   : > { %v1352_v2 = vadd.f32 %v1351_v16, %v1337_v63 }
 0x1f7   : > { %v1294_v18 = vpop.permute.xlu0 %1293 }
 0x1f8   : > { %v1353_v59 = vadd.f32 %v1352_v2, %v1338_v23  ;;  %v1339_v38 = vmul.f32 %v1818_v48, %v1294_v18 }
 0x1fa   : > { %v1354_v5 = vadd.f32 %v1353_v59, %v1339_v38 }
 0x1fb   : > { %v1299_v20 = vpop.permute.xlu1 %1298  ;;  %v1319_v53 = vpop.permute.xlu2 %1318 }
 0x1fc   : > { %v1340_v30 = vmul.f32 %v1821_v45, %v1299_v20  ;;  %v1344_v14 = vmul.f32 %v1827_v25, %v1319_v53 }
 0x1fe   : > { %v1355_v28 = vadd.f32 %v1354_v5, %v1340_v30 }
 0x1ff   : > { %v1309_v6 = vpop.permute.xlu0 %1308 }
 0x200   : > { %v1356_v10 = vadd.f32 %v1355_v28, %v1341_v8  ;;  %v1342_v62 = vmul.f32 %v1824_v51, %v1309_v6 }
 0x202   : > { %v1357_v49 = vadd.f32 %v1356_v10, %v1342_v62 }
 0x203   : > { %v1314_v46 = vpop.permute.xlu1 %1313 }
 0x204   : > { %v1343_v12 = vmul.f32 %v1826_v41, %v1314_v46 }
 0x206   : > { %v1358_v0 = vadd.f32 %v1357_v49, %v1343_v12 }
 0x207   : > { %v1324_v37 = vpop.permute.xlu0 %1323 }
 0x208   : > { %v1359_v9 = vadd.f32 %v1358_v0, %v1344_v14  ;;  %v1345_v11 = vmul.f32 %v1828_v60, %v1324_v37 }
 0x20a   : > { %v1360_v58 = vadd.f32 %v1359_v9, %v1345_v11 }
 0x20b   : > { %v1329_v3 = vpop.permute.xlu1 %1328 }
 0x20c   : > { %v1346_v15 = vmul.f32 %v1829_v29, %v1329_v3 }
 0x20e   : > { %v1361_v22 = vadd.f32 %v1360_v58, %v1346_v15  ;;  %1368 = sbr.rel (%p1542_p2) target bundleno = 668 (0x29c), region = 44 }
 0x210   : > { %v1362_v4 = vadd.f32 %v1361_v22, %v1250_v27 }
 0x212   : > { %1363 = vst [vmem:[#allocation4] sm:$0xff] %v1362_v4 }
 0x213   : > { %v1370_v13 = vld [vmem:[#allocation3] sm:$0xff]  ;;  %v1987_v44 = vmov 0  }
 0x214   : > { %1830 = vset.pattern.permute.xlu0 %v1987_v44 }
 0x215   : > { %1373 = vperm.xlu0 %1830, %v1370_v13  }
 0x219   : > { %v1369_v63 = vld [vmem:[#allocation4] sm:$0xff] }
 0x287   : > { %v1374_v42 = vpop.permute.xlu0 %1373 }
 0x288   : > { %1831 = vrcp.f32 %v1374_v42  ;;  %v1387_v31 = vand.u32 2147483648, %v1374_v42  ;;  %v1385_v35 = vand.u32 2147483647, %v1374_v42  ;;  %vm1381_vm3 = vweird.f32 %v1374_v42 }
 0x28a   : > { %v1388_v17 = vor.u32 1.1754944e-38, %v1387_v31  ;;  %vm1386_vm5 = vcmp.eq.f32.partialorder %v1385_v35, 8.507059e+37 }
 0x28e   : > { %v1832_v43 = vpop.eup %1831 }
 0x28f   : > { %v1377_v7 = vmul.f32 %v1832_v43, %v1374_v42  ;;  %vm1382_vm2 = vweird.f32 %v1832_v43 }
 0x290   : > { %vm1383_vm4 = vmor %vm1381_vm3, %vm1382_vm2 }
 0x291   : > { %v1378_v52 = vsub.f32 1.0, %v1377_v7 }
 0x293   : > { %v1379_v16 = vmul.f32 %v1832_v43, %v1378_v52 }
 0x295   : > { %v1380_v34 = vadd.f32 %v1832_v43, %v1379_v16 }
 0x297   : > { %v1384_v55 = vsel %vm1383_vm4, %v1832_v43, %v1380_v34 }
 0x298   : > { %v1389_v23 = vsel %vm1386_vm5, %v1388_v17, %v1384_v55 }
 0x299   : > { %v1390_v2 = vmul.f32 %v1389_v23, %v1369_v63 }
 0x29b   : > { %1391 = vst [vmem:[#allocation10] sm:$0xff] %v1390_v2 }
 0x29c PF: > { %p1569_p3 = scmp.eq.s32.totalorder %s1483_s15, 3  ;;  %s1402_s19 = sshll.u32 %s2992_s2, 4  ;;  %s1403_s19 = int_to_ptr.hbm [resolvable:$true] %s1402_s19 }
 0x29d   : > { %s1988_s23 = smov [#allocation10]  }
 0x29e   : > { %s1400_s26 = sshll.u32 %s1988_s23, 4  ;;  %s1401_s26 = int_to_ptr.vmem [resolvable:$true] %s1400_s26 }
 0x29f   : > { %1555 = dma.vmem_to_hbm [thread:$0]  (%p1569_p3), %s1401_s26, 128, %s1403_s19, [#allocation7]  }
 0x2a0   : > { %1954 = dma.done.wait (%p1569_p3), [#allocation7], 128  }
 0x2a1   : > { %1956 = vsyncadd (%p1569_p3), [#allocation7], 4294967168 }
 0x2a2 PF: > { %s17_s14 = sadd.s32 1, %s1979_s14   ;;  %s2998_s9 = smov %s1963_s10 }
 0x2a3   : > { %p14_p4 = scmp.ge.s32.totalorder %s17_s14, 6   ;;  %s2999_s10 = smov %s1967_s11 }
 0x2a4   : > { %s3000_s11 = smov %s2087_s18  ;;  %s3001_s12 = smov %s1975_s13 }
 0x2a5   : > { %s3002_s13 = smov %s3004_s27  ;;  %16 = sbr.rel (!%p14_p4) target bundleno = 6 (0x6), region = 84 }
 0x2aa   :  { %1416 = vsyncpa [#allocation6], 1 }
 0x2ab   :  { %1418 = vsyncpa [#allocation6 + $0x1], 1 }
 0x2ac   :  { %1419 = vsyncpa [#allocation9], 1 }
 0x2ad   :  { %1421 = vsyncpa [#allocation9 + $0x1], 1 }
 0x2ae   :  { %1422 = vsyncpa [#allocation7], 1 }
 0x2af   :  { %1424 = vsyncpa [#allocation7 + $0x1], 1 }

</bundles_post_ra>
